<compile_context>
chip_gen: v6e
topology: v6e:2x2x1
jax: 0.10.0
libtpu: 0.0.40
codegen_flags: <defaults>
</compile_context>

<pallas_src>
import functools

import jax
import jax.numpy as jnp
from jax import lax
from jax.experimental import pallas as pl
from jax.experimental.pallas import tpu as pltpu


def _round_up(x, m):
    return (x + m - 1) // m * m


def _vmem_capacity_bytes():
    """Generation-aware VMEM capacity (trace-time query) with safe fallback."""
    try:
        return int(pltpu.get_tpu_info().vmem_capacity_bytes)
    except Exception:
        return 64 * 1024 * 1024  # conservative (v7x-sized) fallback


# --------------------------------------------------------------------------
# Path A: fully VMEM-resident propagation (graph fits on-chip).
# --------------------------------------------------------------------------
def _prop_resident_kernel(a_ref, y_ref, o_ref, *, alp, lam0, lam, prop_step):
    """a_ref: (Np, Np) dense A[dst, src] (zero-padded)
       y_ref: (Np, dp) node features Y0 (zero-padded, lane-dense dp)
       o_ref: (Np, dp) output after prop_step iterations
    """
    A = a_ref[...]
    # In-kernel degree reduce (A already resident in VMEM; XLU lane-reduce).
    deg = jnp.sum(A, axis=1, keepdims=True)              # (Np, 1) in-degrees
    deg = jnp.where(deg > 0.0, deg, 1.0)                 # guard isolated / padded rows
    dinv = 1.0 / deg

    c = alp * lam                                        # static Python scalar
    s = (1.0 - c) - (alp * lam0) * dinv                  # (Np, 1) per-row scale
    # Hoist broadcasts out of the step loop (JAX does not CSE broadcast_in_dim).
    s_b = jnp.broadcast_to(s, y_ref.shape)
    cd_b = jnp.broadcast_to(c * dinv, y_ref.shape)

    u0 = lax.rsqrt(deg) * y_ref[...]                     # U = D^{-1/2} Y0

    def body(_, u):
        # One MXU matmul + one scale/add per step; A stays untouched (no B scratch).
        return s_b * u + cd_b * jnp.dot(a_ref[...], u,
                                        preferred_element_type=jnp.float32)

    unroll = True if prop_step <= 8 else 2               # bound code size for large step counts
    u = lax.fori_loop(0, prop_step, body, u0, unroll=unroll)
    o_ref[...] = jnp.sqrt(deg) * u                       # back to Y space


# --------------------------------------------------------------------------
# Path B: one pallas_call per prop step, gridded over dst-row tiles of A.
# --------------------------------------------------------------------------
def _prop_step_kernel(a_ref, u_full_ref, u_row_ref, o_ref, *, alp, lam0, lam):
    """a_ref:      (tm, Np) dst-row block of A (zero-padded)
       u_full_ref: (Np, dp) full current U (constant block -> resident across grid)
       u_row_ref:  (tm, dp) matching dst-row block of current U
       o_ref:      (tm, dp) dst-row block of the new U
    """
    A = a_ref[...]
    deg = jnp.sum(A, axis=1, keepdims=True)              # (tm, 1) in-degrees of this tile
    deg = jnp.where(deg > 0.0, deg, 1.0)
    dinv = 1.0 / deg
    c = alp * lam
    s = (1.0 - c) - (alp * lam0) * dinv
    z = jnp.dot(A, u_full_ref[...], preferred_element_type=jnp.float32)
    o_ref[...] = s * u_row_ref[...] + (c * dinv) * z


@functools.partial(
    jax.jit, static_argnames=("alp", "lam0", "lam", "prop_step", "force_gridded"))
def unfolding_and_attention_forward(A, X, *, alp, lam0, lam, prop_step,
                                    force_gridded=False):
    """JAX wrapper. A: (N, N) dense adjacency A[dst, src]; X: (N, d) features."""
    N, d = X.shape
    Np = _round_up(max(N, 8), 128)
    dp = _round_up(max(d, 1), 128)       # lane-dense; do NOT over-pad past 128 (MXU fill)

    A = A.astype(jnp.float32)
    X = X.astype(jnp.float32)
    # Skip the pad pass entirely when shapes are already aligned (avoids an
    # extra HBM read+write of the dominant N^2 array).
    A_pad = A if Np == N else jnp.pad(A, ((0, Np - N), (0, Np - N)))
    X_pad = X if (Np == N and dp == d) else jnp.pad(X, ((0, Np - N), (0, dp - d)))

    cap = _vmem_capacity_bytes()
    budget = int(cap * 0.85)             # leave compiler / internal-scratch headroom

    alp = float(alp)
    lam0 = float(lam0)
    lam = float(lam)
    prop_step = int(prop_step)

    # ---------------- Path A: fully resident (A + Y-in + Y-out, f32) -------
    resident_bytes = 4 * (Np * Np + 2 * Np * dp)
    use_resident = (not force_gridded) and int(1.3 * resident_bytes) <= budget

    if use_resident:
        vmem_limit = int(min(max(int(1.5 * resident_bytes), 32 * 1024 * 1024), budget))
        kernel = functools.partial(_prop_resident_kernel, alp=alp, lam0=lam0,
                                   lam=lam, prop_step=prop_step)
        out_pad = pl.pallas_call(
            kernel,
            out_shape=jax.ShapeDtypeStruct((Np, dp), jnp.float32),
            in_specs=[
                pl.BlockSpec(memory_space=pltpu.MemorySpace.VMEM),  # A (padded)
                pl.BlockSpec(memory_space=pltpu.MemorySpace.VMEM),  # X / Y0 (padded)
            ],
            out_specs=pl.BlockSpec(memory_space=pltpu.MemorySpace.VMEM),
            input_output_aliases={1: 0},  # X_pad is a fresh temp -> safe to clobber
            compiler_params=pltpu.CompilerParams(vmem_limit_bytes=vmem_limit),
        )(A_pad, X_pad)
        return out_pad[:N, :d]

    # ---------------- Path B: gridded per-step (megacore, pipelined A) -----
    def gridded_bytes(tm):
        # 2x for double-buffered A tiles / full-U / U row tiles / out tiles.
        return 4 * (2 * tm * Np + 2 * Np * dp + 4 * tm * dp)

    tm = 512
    while tm > 128 and (Np % tm != 0 or gridded_bytes(tm) > budget):
        tm //= 2
    tm = min(tm, Np)

    vmem_limit = int(min(max(int(1.5 * gridded_bytes(tm)), 32 * 1024 * 1024), budget))

    deg = jnp.sum(A_pad, axis=1, keepdims=True)          # one extra A pass, amortized
    deg = jnp.where(deg > 0.0, deg, 1.0)
    u = X_pad * lax.rsqrt(deg)                           # U0 = D^{-1/2} Y0

    step = pl.pallas_call(
        functools.partial(_prop_step_kernel, alp=alp, lam0=lam0, lam=lam),
        out_shape=jax.ShapeDtypeStruct((Np, dp), jnp.float32),
        grid=(Np // tm,),
        in_specs=[
            pl.BlockSpec((tm, Np), lambda i: (i, 0)),    # A dst-row tile (pipelined)
            pl.BlockSpec((Np, dp), lambda i: (0, 0)),    # full U, constant block
            pl.BlockSpec((tm, dp), lambda i: (i, 0)),    # U dst-row tile
        ],
        out_specs=pl.BlockSpec((tm, dp), lambda i: (i, 0)),
        compiler_params=pltpu.CompilerParams(
            dimension_semantics=("parallel",),           # both TCs on v7x
            vmem_limit_bytes=vmem_limit),
    )

    for _ in range(prop_step):
        u = step(A_pad, u, u)

    out_pad = u * jnp.sqrt(deg)                          # back to Y space
    return out_pad[:N, :d]


def reference_forward(A, X, *, alp, lam0, lam, prop_step):
    """Pure-JAX reference mirroring the PyTorch module for verification."""
    A = A.astype(jnp.float32)
    X = X.astype(jnp.float32)
    deg = jnp.sum(A, axis=1, keepdims=True)
    dis = jnp.power(deg, -0.5)
    Y = X
    for _ in range(prop_step):
        Z = dis * (A @ (dis * Y))
        Y = Y - alp * (lam0 * Y / deg + lam * (Y - Z))
    return Y


if __name__ == "__main__":
    # Hyperparameters implied by args (deterministic, synthetic):
    #   hidden=32, lam=1.0, alp=0 -> alp = 1/(lam+1) = 0.5, lam0=0.1, prop_step=4
    # (K / lam_K / gamma are unused on the single-graph, init_att=False path.)
    N, d = 16, 32
    lam = 1.0
    alp = 1.0 / (lam + 1.0)
    lam0 = 0.1
    prop_step = 4

    key = jax.random.PRNGKey(0)
    k_adj, k_x = jax.random.split(key)

    # Deterministic random graph: Bernoulli(0.3) edges + self loops so deg > 0.
    adj = (jax.random.uniform(k_adj, (N, N)) < 0.3).astype(jnp.float32)
    adj = jnp.maximum(adj, jnp.eye(N, dtype=jnp.float32))  # edge weights = 1.0

    X = jax.random.normal(k_x, (N, d), dtype=jnp.float32)

    ref = reference_forward(
        adj, X, alp=alp, lam0=lam0, lam=lam, prop_step=prop_step)

    # Resident path (auto-selected for this small graph).
    out = unfolding_and_attention_forward(
        adj, X, alp=alp, lam0=lam0, lam=lam, prop_step=prop_step)
    out = jax.block_until_ready(out)
    assert out.shape == (N, d)
    assert jnp.allclose(out, ref, atol=1e-4, rtol=1e-4), "resident path mismatch"

    # Gridded per-step path (exercised explicitly for coverage).
    out_g = unfolding_and_attention_forward(
        adj, X, alp=alp, lam0=lam0, lam=lam, prop_step=prop_step,
        force_gridded=True)
    out_g = jax.block_until_ready(out_g)
    assert jnp.allclose(out_g, ref, atol=1e-4, rtol=1e-4), "gridded path mismatch"

    print("KERNEL_OK")
</pallas_src>

<mosaic_0001>
module attributes {stable_mosaic.version = 11 : i64} {
  func.func @_prop_resident_kernel(%arg0: memref<128x128xf32, #tpu.memory_space<vmem>>, %arg1: memref<128x128xf32, #tpu.memory_space<vmem>>, %arg2: memref<128x128xf32, #tpu.memory_space<vmem>>) attributes {dimension_semantics = [], scalar_prefetch = 0 : i64, scratch_operands = 0 : i64, tpu.core_type = #tpu.core_type<tc>} {
    %c0 = arith.constant 0 : index
    %c0_0 = arith.constant 0 : index
    %0 = vector.load %arg0[%c0, %c0_0] : memref<128x128xf32, #tpu.memory_space<vmem>>, vector<128x128xf32>
    %cst = arith.constant dense<0.000000e+00> : vector<128xf32>
    %1 = vector.multi_reduction <add>, %0, %cst [1] : vector<128x128xf32> to vector<128xf32>
    %2 = vector.shape_cast %1 : vector<128xf32> to vector<128x1xf32>
    %cst_1 = arith.constant 0.000000e+00 : f32
    %3 = vector.broadcast %cst_1 : f32 to vector<128x1xf32>
    %4 = arith.cmpf ogt, %2, %3 : vector<128x1xf32>
    %cst_2 = arith.constant 1.000000e+00 : f32
    %5 = vector.broadcast %cst_2 : f32 to vector<128x1xf32>
    %6 = arith.select %4, %2, %5 : vector<128x1xi1>, vector<128x1xf32>
    %cst_3 = arith.constant 1.000000e+00 : f32
    %7 = vector.broadcast %cst_3 : f32 to vector<128x1xf32>
    %8 = arith.divf %7, %6 : vector<128x1xf32>
    %cst_4 = arith.constant 5.000000e-02 : f32
    %9 = vector.broadcast %cst_4 : f32 to vector<128x1xf32>
    %10 = arith.mulf %9, %8 : vector<128x1xf32>
    %cst_5 = arith.constant 5.000000e-01 : f32
    %11 = vector.broadcast %cst_5 : f32 to vector<128x1xf32>
    %12 = arith.subf %11, %10 : vector<128x1xf32>
    %13 = vector.shape_cast %12 : vector<128x1xf32> to vector<128x1xf32>
    %14 = vector.broadcast %13 : vector<128x1xf32> to vector<128x128xf32>
    %cst_6 = arith.constant 5.000000e-01 : f32
    %15 = vector.broadcast %cst_6 : f32 to vector<128x1xf32>
    %16 = arith.mulf %15, %8 : vector<128x1xf32>
    %17 = vector.shape_cast %16 : vector<128x1xf32> to vector<128x1xf32>
    %18 = vector.broadcast %17 : vector<128x1xf32> to vector<128x128xf32>
    %19 = math.rsqrt %6 : vector<128x1xf32>
    %c0_7 = arith.constant 0 : index
    %c0_8 = arith.constant 0 : index
    %20 = vector.load %arg1[%c0_7, %c0_8] : memref<128x128xf32, #tpu.memory_space<vmem>>, vector<128x128xf32>
    %21 = vector.broadcast %19 : vector<128x1xf32> to vector<128x128xf32>
    %22 = arith.mulf %21, %20 : vector<128x128xf32>
    %c0_i32 = arith.constant 0 : i32
    %23 = arith.mulf %14, %22 : vector<128x128xf32>
    %c0_9 = arith.constant 0 : index
    %c0_10 = arith.constant 0 : index
    %24 = vector.load %arg0[%c0_9, %c0_10] : memref<128x128xf32, #tpu.memory_space<vmem>>, vector<128x128xf32>
    %cst_11 = arith.constant dense<0.000000e+00> : vector<128x128xf32>
    %25 = tpu.matmul %24, %22, %cst_11 {dimension_numbers = #tpu.dot_dimension_numbers<[1], [0], [0], [1], [0, 0, 1, 1], [], []>} : vector<128x128xf32>, vector<128x128xf32>, vector<128x128xf32> -> vector<128x128xf32>
    %26 = arith.mulf %18, %25 : vector<128x128xf32>
    %27 = arith.addf %23, %26 : vector<128x128xf32>
    %c1_i32 = arith.constant 1 : i32
    %28 = arith.mulf %14, %27 : vector<128x128xf32>
    %c0_12 = arith.constant 0 : index
    %c0_13 = arith.constant 0 : index
    %29 = vector.load %arg0[%c0_12, %c0_13] : memref<128x128xf32, #tpu.memory_space<vmem>>, vector<128x128xf32>
    %cst_14 = arith.constant dense<0.000000e+00> : vector<128x128xf32>
    %30 = tpu.matmul %29, %27, %cst_14 {dimension_numbers = #tpu.dot_dimension_numbers<[1], [0], [0], [1], [0, 0, 1, 1], [], []>} : vector<128x128xf32>, vector<128x128xf32>, vector<128x128xf32> -> vector<128x128xf32>
    %31 = arith.mulf %18, %30 : vector<128x128xf32>
    %32 = arith.addf %28, %31 : vector<128x128xf32>
    %c2_i32 = arith.constant 2 : i32
    %33 = arith.mulf %14, %32 : vector<128x128xf32>
    %c0_15 = arith.constant 0 : index
    %c0_16 = arith.constant 0 : index
    %34 = vector.load %arg0[%c0_15, %c0_16] : memref<128x128xf32, #tpu.memory_space<vmem>>, vector<128x128xf32>
    %cst_17 = arith.constant dense<0.000000e+00> : vector<128x128xf32>
    %35 = tpu.matmul %34, %32, %cst_17 {dimension_numbers = #tpu.dot_dimension_numbers<[1], [0], [0], [1], [0, 0, 1, 1], [], []>} : vector<128x128xf32>, vector<128x128xf32>, vector<128x128xf32> -> vector<128x128xf32>
    %36 = arith.mulf %18, %35 : vector<128x128xf32>
    %37 = arith.addf %33, %36 : vector<128x128xf32>
    %c3_i32 = arith.constant 3 : i32
    %38 = arith.mulf %14, %37 : vector<128x128xf32>
    %c0_18 = arith.constant 0 : index
    %c0_19 = arith.constant 0 : index
    %39 = vector.load %arg0[%c0_18, %c0_19] : memref<128x128xf32, #tpu.memory_space<vmem>>, vector<128x128xf32>
    %cst_20 = arith.constant dense<0.000000e+00> : vector<128x128xf32>
    %40 = tpu.matmul %39, %37, %cst_20 {dimension_numbers = #tpu.dot_dimension_numbers<[1], [0], [0], [1], [0, 0, 1, 1], [], []>} : vector<128x128xf32>, vector<128x128xf32>, vector<128x128xf32> -> vector<128x128xf32>
    %41 = arith.mulf %18, %40 : vector<128x128xf32>
    %42 = arith.addf %38, %41 : vector<128x128xf32>
    %43 = math.sqrt %6 : vector<128x1xf32>
    %44 = vector.broadcast %43 : vector<128x1xf32> to vector<128x128xf32>
    %45 = arith.mulf %44, %42 : vector<128x128xf32>
    %c0_21 = arith.constant 0 : index
    %c0_22 = arith.constant 0 : index
    %46 = vector.load %arg2[%c0_21, %c0_22] : memref<128x128xf32, #tpu.memory_space<vmem>>, vector<128x128xf32>
    tpu.vector_store %arg2[%c0_21, %c0_22], %45 {strides = array<i32>} : memref<128x128xf32, #tpu.memory_space<vmem>>, vector<128x128xf32>,
    return
  }
}

</mosaic_0001>

<bundles_post_ra>
// kernel: unfolding_and_attention_forward.1
= control target key start
LH: loop header
LB: loop body
LE: loop exit
PB: predicated region body
PF: predicated region fallthrough
CT: control target
= control target key end

     0   :  { %s2740_s0 = inlined_call_operand.vmem [shape: f32[128,128], index: 0, kind: input, shape index: {}]   ;;  %s2741_s1 = inlined_call_operand.vmem [shape: f32[128,128], index: 1, kind: input, shape index: {}, may-alias: {1,2}]   ;;  %s2742_s2 = inlined_call_operand.vmem [shape: f32[128,128], index: 2, kind: output, shape index: {}, may-alias: {1,2}]  }
   0x1   :  { %v1588_v0 = vld [vmem:[%s2740_s0 + $0x78] sm:$0xff]  ;;  %v1593_v1 = vld [vmem:[%s2740_s0 + $0x68] sm:$0xff]  ;;  %v1600_v2 = vld [vmem:[%s2740_s0 + $0x70] sm:$0xff] }
   0x2   :  { %57 = vadd.xlane.f32.xlu0 %v1588_v0  ;;  %53 = vadd.xlane.f32.xlu1 %v1593_v1  ;;  %v1605_v3 = vld [vmem:[%s2740_s0 + $0x60] sm:$0xff]  ;;  %v1617_v5 = vld [vmem:[%s2740_s0 + $0x58] sm:$0xff]  ;;  %v1622_v6 = vld [vmem:[%s2740_s0 + $0x50] sm:$0xff] }
   0x3   :  { %v1612_v4 = vld [vmem:[%s2740_s0] sm:$0xff]  ;;  %v1631_v7 = vld [vmem:[%s2740_s0 + $0x48] sm:$0xff]  ;;  %v1643_v9 = vld [vmem:[%s2740_s0 + $0x38] sm:$0xff] }
   0x4   :  { %2803 = vst [vmem:[#allocation2_spill] sm:$0xff] %v1612_v4  ;;  %1299 = vmatprep.mubr.f32.mxu0 %v1612_v4  ;;  %1355 = vmatprep.mubr.f32.mxu1 %v1612_v4  ;;  %v1636_v8 = vld [vmem:[%s2740_s0 + $0x40] sm:$0xff]  ;;  %v1648_v10 = vld [vmem:[%s2740_s0 + $0x30] sm:$0xff]  ;;  %v1655_v11 = vld [vmem:[%s2740_s0 + $0x28] sm:$0xff] }
   0x5   :  { %v1660_v12 = vld [vmem:[%s2740_s0 + $0x20] sm:$0xff]  ;;  %v1667_v13 = vld [vmem:[%s2740_s0 + $0x18] sm:$0xff]  ;;  %v1672_v14 = vld [vmem:[%s2740_s0 + $0x10] sm:$0xff] }
   0x6   :  { %55 = vadd.xlane.f32.xlu0 %v1600_v2  ;;  %51 = vadd.xlane.f32.xlu1 %v1605_v3  ;;  %v1679_v15 = vld [vmem:[%s2740_s0 + $0x8] sm:$0xff]  ;;  %v202_v32 = vld [vmem:[%s2741_s1 + $0x78] sm:$0xff]  ;;  %v201_v39 = vld [vmem:[%s2741_s1 + $0x70] sm:$0xff] }
   0x7   :  { %v200_v43 = vld [vmem:[%s2741_s1 + $0x68] sm:$0xff]  ;;  %v199_v44 = vld [vmem:[%s2741_s1 + $0x60] sm:$0xff]  ;;  %v198_v50 = vld [vmem:[%s2741_s1 + $0x58] sm:$0xff] }
   0x8   :  { %v197_v56 = vld [vmem:[%s2741_s1 + $0x50] sm:$0xff]  ;;  %v196_v61 = vld [vmem:[%s2741_s1 + $0x48] sm:$0xff] }
   0xa   :  { %49 = vadd.xlane.f32.xlu0 %v1617_v5  ;;  %47 = vadd.xlane.f32.xlu1 %v1622_v6 }
   0xe   :  { %45 = vadd.xlane.f32.xlu0 %v1631_v7  ;;  %43 = vadd.xlane.f32.xlu1 %v1636_v8 }
  0x12   :  { %41 = vadd.xlane.f32.xlu0 %v1643_v9  ;;  %39 = vadd.xlane.f32.xlu1 %v1648_v10 }
  0x16   :  { %37 = vadd.xlane.f32.xlu0 %v1655_v11  ;;  %35 = vadd.xlane.f32.xlu1 %v1660_v12 }
  0x1a   :  { %33 = vadd.xlane.f32.xlu0 %v1667_v13  ;;  %31 = vadd.xlane.f32.xlu1 %v1672_v14 }
  0x1e   :  { %29 = vadd.xlane.f32.xlu0 %v1679_v15  ;;  %27 = vadd.xlane.f32.xlu1 %v1612_v4 }
  0x8b   :  { %v58_v16 = vpop.xlane.xlu0 %57  ;;  %v54_v17 = vpop.xlane.xlu1 %53 }
  0x8c   :  { %vm74_vm0 = vcmp.gt.f32.partialorder %v58_v16, 0.0  ;;  %vm72_vm1 = vcmp.gt.f32.partialorder %v54_v17, 0.0 }
  0x8d   :  { %v1683_v18 = vsel %vm74_vm0, %v58_v16, 1.0  ;;  %v1686_v21 = vsel %vm72_vm1, %v54_v17, 1.0 }
  0x8e   :  { %1491 = vrsqrt.f32 %v1683_v18 }
  0x8f   :  { %v56_v19 = vpop.xlane.xlu0 %55  ;;  %v52_v20 = vpop.xlane.xlu1 %51 }
  0x90   :  { %vm73_vm2 = vcmp.gt.f32.partialorder %v56_v19, 0.0  ;;  %vm71_vm3 = vcmp.gt.f32.partialorder %v52_v20, 0.0 }
  0x91   :  { %v1688_v22 = vsel %vm73_vm2, %v56_v19, 1.0  ;;  %v1690_v23 = vsel %vm71_vm3, %v52_v20, 1.0  ;;  %v195_v19 = vld [vmem:[%s2741_s1 + $0x40] sm:$0xff] }
  0x92   :  { %1493 = vrsqrt.f32 %v1688_v22 }
  0x93   :  { %v50_v24 = vpop.xlane.xlu0 %49  ;;  %v48_v25 = vpop.xlane.xlu1 %47  ;;  %1495 = vrsqrt.f32 %v1686_v21 }
  0x94   :  { %vm70_vm4 = vcmp.gt.f32.partialorder %v50_v24, 0.0  ;;  %vm69_vm5 = vcmp.gt.f32.partialorder %v48_v25, 0.0  ;;  %1497 = vrsqrt.f32 %v1690_v23 }
  0x95   :  { %v1695_v26 = vsel %vm70_vm4, %v50_v24, 1.0  ;;  %v1697_v27 = vsel %vm69_vm5, %v48_v25, 1.0 }
  0x96   :  { %1499 = vrsqrt.f32 %v1695_v26 }
  0x97   :  { %v46_v28 = vpop.xlane.xlu0 %45  ;;  %v44_v29 = vpop.xlane.xlu1 %43  ;;  %1501 = vrsqrt.f32 %v1697_v27 }
  0x98   :  { %vm68_vm6 = vcmp.gt.f32.partialorder %v46_v28, 0.0  ;;  %vm67_vm7 = vcmp.gt.f32.partialorder %v44_v29, 0.0 }
  0x99   :  { %v1701_v30 = vsel %vm68_vm6, %v46_v28, 1.0  ;;  %v1703_v31 = vsel %vm67_vm7, %v44_v29, 1.0  ;;  %v194_v29 = vld [vmem:[%s2741_s1 + $0x38] sm:$0xff] }
  0x9a   :  { %1503 = vrsqrt.f32 %v1701_v30  ;;  %vm1056_vm7 = vcmp.eq.f32.partialorder %v1701_v30, inf }
  0x9b   :  { %v42_v33 = vpop.xlane.xlu0 %41  ;;  %v40_v34 = vpop.xlane.xlu1 %39  ;;  %1505 = vrsqrt.f32 %v1703_v31 }
  0x9c   :  { %v1709_v35 = vpop.eup %1491  ;;  %vm66_vm8 = vcmp.gt.f32.partialorder %v42_v33, 0.0  ;;  %vm65_vm9 = vcmp.gt.f32.partialorder %v40_v34, 0.0 }
  0x9d   :  { %v1712_v36 = vsel %vm66_vm8, %v42_v33, 1.0  ;;  %v1715_v37 = vmul.f32 %v1709_v35, %v202_v32  ;;  %v1717_v38 = vsel %vm65_vm9, %v40_v34, 1.0  ;;  %v193_v34 = vld [vmem:[%s2741_s1 + $0x30] sm:$0xff]  ;;  %vm1058_vm9 = vcmp.eq.f32.partialorder %v1701_v30, 0.0 }
  0x9e   :  { %1507 = vrsqrt.f32 %v1712_v36  ;;  %vm1042_vm4 = vcmp.eq.f32.partialorder %v1712_v36, inf }
  0x9f   :  { %1267 = vmatprep.subr.mxu0 %v1715_v37  ;;  %v38_v40 = vpop.xlane.xlu0 %37  ;;  %v36_v41 = vpop.xlane.xlu1 %35  ;;  %1509 = vrsqrt.f32 %v1717_v38 }
  0xa0   :  { %v1724_v42 = vpop.eup %1493  ;;  %1268 = vmatpush3.msra.mxu0 %v1715_v37  ;;  %vm64_vm10 = vcmp.gt.f32.partialorder %v38_v40, 0.0  ;;  %vm63_vm11 = vcmp.gt.f32.partialorder %v36_v41, 0.0 }
  0xa1   :  { %v1733_v45 = vpop.eup %1495  ;;  %v1736_v46 = vsel %vm64_vm10, %v38_v40, 1.0  ;;  %v1739_v47 = vmul.f32 %v1724_v42, %v201_v39  ;;  %v1743_v49 = vsel %vm63_vm11, %v36_v41, 1.0  ;;  %v192_v41 = vld [vmem:[%s2741_s1 + $0x28] sm:$0xff]  ;;  %vm1049_vm10 = vcmp.eq.f32.partialorder %v1703_v31, inf }
  0xa2   :  { %v1741_v48 = vpop.eup %1497  ;;  %1511 = vrsqrt.f32 %v1736_v46  ;;  %v1751_v53 = vmul.f32 %v1733_v45, %v200_v43  ;;  %vm1070_vm11 = vcmp.eq.f32.partialorder %v1695_v26, inf }
  0xa3   :  { %1269 = vmatprep.subr.mxu0 %v1739_v47  ;;  %v34_v51 = vpop.xlane.xlu0 %33  ;;  %v32_v52 = vpop.xlane.xlu1 %31  ;;  %v1754_v54 = vmul.f32 %v1741_v48, %v199_v44  ;;  %1513 = vrsqrt.f32 %v1743_v49 }
  0xa4   :  { %v1756_v55 = vpop.eup %1499  ;;  %1270 = vmatpush3.msra.mxu0 %v1739_v47  ;;  %vm62_vm12 = vcmp.gt.f32.partialorder %v34_v51, 0.0  ;;  %vm61_vm13 = vcmp.gt.f32.partialorder %v32_v52, 0.0 }
  0xa5   :  { %v1763_v57 = vsel %vm62_vm12, %v34_v51, 1.0  ;;  %1271 = vmatprep.subr.mxu0 %v1751_v53  ;;  %v1767_v58 = vmul.f32 %v1756_v55, %v198_v50  ;;  %v1769_v59 = vpop.eup %1501  ;;  %v1771_v60 = vsel %vm61_vm13, %v32_v52, 1.0  ;;  %v191_v50 = vld [vmem:[%s2741_s1 + $0x20] sm:$0xff]  ;;  %vm1028_vm13 = vcmp.eq.f32.partialorder %v1736_v46, inf }
  0xa6   :  { %1272 = vmatpush3.msra.mxu0 %v1751_v53  ;;  %1515 = vrsqrt.f32 %v1763_v57  ;;  %v1780_v16 = vmul.f32 %v1769_v59, %v197_v56  ;;  %v190_v56 = vld [vmem:[%s2741_s1 + $0x18] sm:$0xff]  ;;  %vm1014_vm0 = vcmp.eq.f32.partialorder %v1763_v57, inf  ;;  %vm1016_vm3 = vcmp.eq.f32.partialorder %v1763_v57, 0.0 }
  0xa7   :  { %1273 = vmatprep.subr.mxu0 %v1754_v54  ;;  %v30_v62 = vpop.xlane.xlu0 %29  ;;  %v28_v63 = vpop.xlane.xlu1 %27  ;;  %1517 = vrsqrt.f32 %v1771_v60  ;;  %vm1007_vm6 = vcmp.eq.f32.partialorder %v1771_v60, inf  ;;  %vm1009_vm12 = vcmp.eq.f32.partialorder %v1771_v60, 0.0 }
  0xa8   :  { %2804 = vst [vmem:[#allocation3_spill] sm:$0xff] %v1780_v16  ;;  %v1782_v17 = vpop.eup %1503  ;;  %1274 = vmatpush3.msra.mxu0 %v1754_v54  ;;  %vm60_vm14 = vcmp.gt.f32.partialorder %v30_v62, 0.0  ;;  %vm59_vm15 = vcmp.gt.f32.partialorder %v28_v63, 0.0 }
  0xa9   :  { %v1789_v20 = vsel %vm60_vm14, %v30_v62, 1.0  ;;  %1275 = vmatprep.subr.mxu0 %v1767_v58  ;;  %v1793_v24 = vmul.f32 %v1782_v17, %v196_v61  ;;  %v1795_v25 = vpop.eup %1505  ;;  %v1797_v28 = vsel %vm59_vm15, %v28_v63, 1.0  ;;  %v189_v63 = vld [vmem:[%s2741_s1 + $0x10] sm:$0xff]  ;;  %vm1051_vm14 = vcmp.eq.f32.partialorder %v1703_v31, 0.0 }
  0xaa   :  { %1276 = vmatpush3.msra.mxu0 %v1767_v58  ;;  %1519 = vrsqrt.f32 %v1789_v20  ;;  %v1806_v32 = vmul.f32 %v1795_v25, %v195_v19  ;;  %vm1000_vm1 = vcmp.eq.f32.partialorder %v1789_v20, inf  ;;  %vm1002_vm2 = vcmp.eq.f32.partialorder %v1789_v20, 0.0 }
  0xab   :  { %2805 = vst [vmem:[#allocation4_spill] sm:$0xff] %v1793_v24  ;;  %1277 = vmatprep.subr.mxu0 %v1780_v16  ;;  %v1808_v33 = vpop.eup %1507  ;;  %1521 = vrsqrt.f32 %v1797_v28  ;;  %vm993_vm5 = vcmp.eq.f32.partialorder %v1797_v28, inf  ;;  %vm995_vm8 = vcmp.eq.f32.partialorder %v1797_v28, 0.0  ;;  %vm1072_vm15 = vcmp.eq.f32.partialorder %v1695_v26, 0.0 }
  0xac   :  { %2806 = vst [vmem:[#allocation5_spill] sm:$0xff] %v1806_v32  ;;  %1278 = vmatpush3.msra.mxu0 %v1780_v16  ;;  %v1817_v39 = vmul.f32 %v1808_v33, %v194_v29  ;;  %v1819_v40 = vpop.eup %1509  ;;  %1523 = vrcp.f32 %v1683_v18 }
  0xad   :  { %1279 = vmatprep.subr.mxu0 %v1793_v24  ;;  %v1827_v43 = vmul.f32 %v1819_v40, %v193_v34  ;;  %1525 = vrcp.f32 %v1688_v22 }
  0xae   :  { %2807 = vst [vmem:[#allocation6_spill] sm:$0xff] %v1817_v39  ;;  %1280 = vmatpush3.msra.mxu0 %v1793_v24  ;;  %1527 = vrcp.f32 %v1686_v21 }
  0xaf   :  { %1281 = vmatprep.subr.mxu0 %v1806_v32  ;;  %2808 = vst [vmem:[#allocation7_spill] sm:$0xff] %v1827_v43  ;;  %v1829_v44 = vpop.eup %1511  ;;  %1529 = vrcp.f32 %v1690_v23 }
  0xb0   :  { %1282 = vmatpush3.msra.mxu0 %v1806_v32  ;;  %v1837_v51 = vmul.f32 %v1829_v44, %v192_v41  ;;  %v1839_v52 = vpop.eup %1513  ;;  %v188_v41 = vld [vmem:[%s2741_s1 + $0x8] sm:$0xff]  ;;  %1531 = vrcp.f32 %v1695_v26 }
  0xb1   :  { %1283 = vmatprep.subr.mxu0 %v1817_v39  ;;  %v1847_v61 = vmul.f32 %v1839_v52, %v191_v50  ;;  %v1017_v50 = vand.u32 2147483648, %v1763_v57  ;;  %1533 = vrcp.f32 %v1697_v27 }
  0xb2   :  { %2809 = vst [vmem:[#allocation8_spill] sm:$0xff] %v1837_v51  ;;  %1284 = vmatpush3.msra.mxu0 %v1817_v39  ;;  %1535 = vrcp.f32 %v1701_v30 }
  0xb3   :  { %1285 = vmatprep.subr.mxu0 %v1827_v43  ;;  %2810 = vst [vmem:[#allocation9_spill] sm:$0xff] %v1847_v61  ;;  %v1516_v62 = vpop.eup %1515  ;;  %1537 = vrcp.f32 %v1703_v31 }
  0xb4   :  { %1286 = vmatpush3.msra.mxu0 %v1827_v43  ;;  %v1854_v19 = vmul.f32 %v1516_v62, %v190_v56  ;;  %v1013_v29 = vmul.f32 %v1516_v62, %v1763_v57  ;;  %v1518_v34 = vpop.eup %1517  ;;  %1539 = vrcp.f32 %v1712_v36 }
  0xb5   :  { %1287 = vmatprep.subr.mxu0 %v1837_v51  ;;  %v1863_v43 = vmul.f32 %v1518_v34, %v189_v63  ;;  %v1003_v63 = vand.u32 2147483648, %v1789_v20  ;;  %1541 = vrcp.f32 %v1717_v38 }
  0xb6   :  { %2811 = vst [vmem:[#allocation10_spill] sm:$0xff] %v1854_v19  ;;  %1288 = vmatpush3.msra.mxu0 %v1837_v51  ;;  %v187_v51 = vld [vmem:[%s2741_s1] sm:$0xff]  ;;  %v1015_v39 = vsel %vm1014_vm0, %v1763_v57, %v1013_v29  ;;  %vm1063_vm0 = vcmp.eq.f32.partialorder %v1697_v27, inf  ;;  %1543 = vrcp.f32 %v1736_v46 }
  0xb7   :  { %1289 = vmatprep.subr.mxu0 %v1847_v61  ;;  %v1520_v62 = vpop.eup %1519  ;;  %1545 = vrcp.f32 %v1743_v49 }
  0xb8   :  { %1290 = vmatpush3.msra.mxu0 %v1847_v61  ;;  %v1877_v56 = vmul.f32 %v1520_v62, %v188_v41  ;;  %v999_v32 = vmul.f32 %v1520_v62, %v1789_v20  ;;  %v1006_v61 = vmul.f32 %v1518_v34, %v1771_v60  ;;  %v1522_v16 = vpop.eup %1521  ;;  %v1893_v62 = vsel %vm1016_vm3, %v1017_v50, %v1015_v39 }
  0xb9   :  { %1291 = vmatprep.subr.mxu0 %v1854_v19  ;;  %v1889_v41 = vmul.f32 %v1522_v16, %v187_v51  ;;  %v992_v34 = vmul.f32 %v1522_v16, %v1797_v28  ;;  %2812 = vst [vmem:[#allocation11_spill] sm:$0xff] %v1893_v62  ;;  %v1010_v39 = vand.u32 2147483648, %v1771_v60  ;;  %v1027_v50 = vmul.f32 %v1829_v44, %v1736_v46 }
  0xba   :  { %1292 = vmatpush3.msra.mxu0 %v1854_v19  ;;  %v1001_v29 = vsel %vm1000_vm1, %v1789_v20, %v999_v32  ;;  %v996_v19 = vand.u32 2147483648, %v1797_v28  ;;  %v1008_v16 = vsel %vm1007_vm6, %v1771_v60, %v1006_v61  ;;  %v1020_v44 = vmul.f32 %v1839_v52, %v1743_v49 }
  0xbb   :  { %1293 = vmatprep.subr.mxu0 %v1863_v43  ;;  %v1896_v24 = vsel %vm1002_vm2, %v1003_v63, %v1001_v29  ;;  %v994_v32 = vsel %vm993_vm5, %v1797_v28, %v992_v34  ;;  %v1922_v61 = vsel %vm1009_vm12, %v1010_v39, %v1008_v16  ;;  %vm1030_vm2 = vcmp.eq.f32.partialorder %v1736_v46, 0.0 }
  0xbc   :  { %1294 = vmatpush3.msra.mxu0 %v1863_v43  ;;  %2813 = vst [vmem:[#allocation12_spill] sm:$0xff] %v1896_v24  ;;  %v1911_v51 = vsel %vm995_vm8, %v996_v19, %v994_v32  ;;  %2815 = vst [vmem:[#allocation14_spill] sm:$0xff] %v1922_v61  ;;  %v1031_v19 = vand.u32 2147483648, %v1736_v46  ;;  %vm1065_vm3 = vcmp.eq.f32.partialorder %v1697_v27, 0.0  ;;  %vm1086_vm5 = vcmp.eq.f32.partialorder %v1686_v21, 0.0 }
  0xbd   :  { %1295 = vmatprep.subr.mxu0 %v1877_v56  ;;  %2814 = vst [vmem:[#allocation13_spill] sm:$0xff] %v1911_v51  ;;  %v1029_v63 = vsel %vm1028_vm13, %v1736_v46, %v1027_v50  ;;  %vm1021_vm8 = vcmp.eq.f32.partialorder %v1743_v49, inf  ;;  %vm1023_vm12 = vcmp.eq.f32.partialorder %v1743_v49, 0.0  ;;  %v1024_v29 = vand.u32 2147483648, %v1743_v49 }
  0xbe   :  { %1296 = vmatpush3.msra.mxu0 %v1877_v56  ;;  %vm1079_vm1 = vcmp.eq.f32.partialorder %v1690_v23, 0.0  ;;  %v1938_v52 = vsel %vm1030_vm2, %v1031_v19, %v1029_v63  ;;  %v1022_v34 = vsel %vm1021_vm8, %v1743_v49, %v1020_v44  ;;  %v1041_v32 = vmul.f32 %v1808_v33, %v1712_v36 }
  0xbf   :  { %1297 = vmatprep.subr.mxu0 %v1889_v41  ;;  %2816 = vst [vmem:[#allocation15_spill] sm:$0xff] %v1938_v52  ;;  %vm1044_vm6 = vcmp.eq.f32.partialorder %v1712_v36, 0.0  ;;  %v1945_v16 = vsel %vm1023_vm12, %v1024_v29, %v1022_v34  ;;  %v1045_v39 = vand.u32 2147483648, %v1712_v36  ;;  %v1034_v50 = vmul.f32 %v1819_v40, %v1717_v38 }
  0xc0   :  { %1298 = vmatpush3.msra.mxu0 %v1889_v41  ;;  %2817 = vst [vmem:[#allocation16_spill] sm:$0xff] %v1945_v16  ;;  %vm1035_vm13 = vcmp.eq.f32.partialorder %v1717_v38, inf  ;;  %v1043_v19 = vsel %vm1042_vm4, %v1712_v36, %v1041_v32  ;;  %vm1037_vm2 = vcmp.eq.f32.partialorder %v1717_v38, 0.0  ;;  %v1038_v33 = vand.u32 2147483648, %v1717_v38 }
  0xc1   :  { %1300 = vmatmul.mubr.f32.vlgmr.msra.gmra.mxu0 %v1679_v15  ;;  %v1055_v44 = vmul.f32 %v1782_v17, %v1701_v30  ;;  %v1958_v63 = vsel %vm1044_vm6, %v1045_v39, %v1043_v19  ;;  %v1036_v29 = vsel %vm1035_vm13, %v1717_v38, %v1034_v50  ;;  %v1048_v40 = vmul.f32 %v1795_v25, %v1703_v31 }
  0xc2   :  { %1302 = vmatprep.mubr.f32.mxu0 %v1672_v14  ;;  %2818 = vst [vmem:[#allocation17_spill] sm:$0xff] %v1958_v63  ;;  %v1069_v34 = vmul.f32 %v1756_v55, %v1695_v26  ;;  %v1966_v32 = vsel %vm1037_vm2, %v1038_v33, %v1036_v29  ;;  %v1062_v17 = vmul.f32 %v1769_v59, %v1697_v27  ;;  %v2820_v25 = vand.u32 2147483648, %v1701_v30 }
  0xc3   :  { %2819 = vst [vmem:[#allocation18_spill] sm:$0xff] %v1966_v32  ;;  %v1057_v16 = vsel %vm1056_vm7, %v1701_v30, %v1055_v44  ;;  %v1083_v39 = vmul.f32 %v1733_v45, %v1686_v21  ;;  %v1050_v50 = vsel %vm1049_vm10, %v1703_v31, %v1048_v40  ;;  %v1076_v59 = vmul.f32 %v1741_v48, %v1690_v23 }
  0xc4   :  { %v1980_v55 = vsel %vm1058_vm9, %v2820_v25, %v1057_v16  ;;  %v1071_v19 = vsel %vm1070_vm11, %v1695_v26, %v1069_v34  ;;  %v2822_v45 = vand.u32 2147483648, %v1703_v31  ;;  %v2824_v16 = vand.u32 2147483648, %v1695_v26 }
  0xc5   :  { %1303 = vmatmul.mubr.f32.gmra.mxu0 %v1667_v13  ;;  %2821 = vst [vmem:[#allocation19_spill] sm:$0xff] %v1980_v55  ;;  %v1064_v29 = vsel %vm1063_vm0, %v1697_v27, %v1062_v17  ;;  %vm2826_vm4 = vcmp.eq.f32.partialorder %v1686_v21, inf  ;;  %v2827_v40 = vand.u32 2147483648, %v1697_v27  ;;  %v2829_v25 = vand.u32 2147483648, %v1686_v21 }
  0xc6   :  { %1305 = vmatprep.mubr.f32.mxu0 %v1660_v12  ;;  %v1994_v33 = vsel %vm1051_vm14, %v2822_v45, %v1050_v50  ;;  %v2000_v44 = vsel %vm1072_vm15, %v2824_v16, %v1071_v19  ;;  %v1085_v48 = vsel %vm2826_vm4, %v1686_v21, %v1083_v39  ;;  %vm2831_vm7 = vcmp.eq.f32.partialorder %v1690_v23, inf }
  0xc7   :  { %2823 = vst [vmem:[#allocation20_spill] sm:$0xff] %v1994_v33  ;;  %2825 = vst [vmem:[#allocation21_spill] sm:$0xff] %v2000_v44  ;;  %v2012_v34 = vsel %vm1065_vm3, %v2827_v40, %v1064_v29  ;;  %v2018_v50 = vsel %vm1086_vm5, %v2829_v25, %v1085_v48  ;;  %v1078_v17 = vsel %vm2831_vm7, %v1690_v23, %v1076_v59  ;;  %v2832_v39 = vand.u32 2147483648, %v1690_v23 }
  0xc8   :  { %2828 = vst [vmem:[#allocation22_spill] sm:$0xff] %v2012_v34  ;;  %2830 = vst [vmem:[#allocation23_spill] sm:$0xff] %v2018_v50  ;;  %v1097_v19 = vmul.f32 %v1709_v35, %v1683_v18  ;;  %vm1098_vm9 = vcmp.eq.f32.partialorder %v1683_v18, inf  ;;  %v1101_v16 = vand.u32 2147483648, %v1683_v18  ;;  %v1090_v29 = vmul.f32 %v1724_v42, %v1688_v22 }
  0xc9   :  { %1306 = vmatmul.mubr.f32.gmra.mxu0 %v1655_v11  ;;  %v2030_v45 = vsel %vm1079_vm1, %v2832_v39, %v1078_v17  ;;  %vm1100_vm10 = vcmp.eq.f32.partialorder %v1683_v18, 0.0  ;;  %vm1091_vm11 = vcmp.eq.f32.partialorder %v1688_v22, inf  ;;  %v1094_v35 = vand.u32 2147483648, %v1688_v22 }
  0xca   :  { %2833 = vst [vmem:[#allocation24_spill] sm:$0xff] %v2030_v45  ;;  %1308 = vmatprep.mubr.f32.mxu0 %v1648_v10  ;;  %v1099_v59 = vsel %vm1098_vm9, %v1683_v18, %v1097_v19  ;;  %v1092_v40 = vsel %vm1091_vm11, %v1688_v22, %v1090_v29  ;;  %vm1093_vm14 = vcmp.eq.f32.partialorder %v1688_v22, 0.0  ;;  %v1524_v22 = vpop.eup %1523  ;;  %1547 = vrcp.f32 %v1763_v57 }
  0xcb   :  { %v2041_v48 = vsel %vm1100_vm10, %v1101_v16, %v1099_v59  ;;  %v2045_v25 = vsel %vm1093_vm14, %v1094_v35, %v1092_v40  ;;  %v1526_v23 = vpop.eup %1525  ;;  %v138_v26 = vmul.f32 0.05, %v1524_v22  ;;  %v2091_v32 = vmul.f32 0.5, %v1524_v22 }
  0xcc   :  { %2834 = vst [vmem:[#allocation25_spill] sm:$0xff] %v2041_v48  ;;  %2835 = vst [vmem:[#allocation26_spill] sm:$0xff] %v2045_v25  ;;  %v1528_v25 = vpop.eup %1527  ;;  %v137_v27 = vmul.f32 0.05, %v1526_v23  ;;  %v2103_v62 = vmul.f32 0.5, %v1526_v23  ;;  %1549 = vrcp.f32 %v1771_v60 }
  0xcd   :  { %1309 = vmatmul.mubr.f32.gmra.mxu0 %v1643_v9  ;;  %v1530_v45 = vpop.eup %1529  ;;  %v136_v30 = vmul.f32 0.05, %v1528_v25  ;;  %v2088_v44 = vsub.f32 0.5, %v138_v26  ;;  %v2097_v38 = vmul.f32 0.5, %v1528_v25  ;;  %1551 = vrcp.f32 %v1789_v20 }
  0xce   :  { %1311 = vmatprep.mubr.f32.mxu0 %v1636_v8  ;;  %v1532_v34 = vpop.eup %1531  ;;  %v135_v31 = vmul.f32 0.05, %v1530_v45  ;;  %v2093_v36 = vsub.f32 0.5, %v137_v27  ;;  %1553 = vrcp.f32 %v1797_v28 }
  0xcf   :  { %v1534_v55 = vpop.eup %1533  ;;  %v134_v63 = vmul.f32 0.05, %v1532_v34  ;;  %v2095_v52 = vsub.f32 0.5, %v136_v30  ;;  %v234_v26 = vmul.f32 %v1715_v37, %v2088_v44  ;;  %v2108_v30 = vmul.f32 0.5, %v1530_v45 }
  0xd0   :  { %v1536_v61 = vpop.eup %1535  ;;  %v133_v22 = vmul.f32 0.05, %v1534_v55  ;;  %v2106_v27 = vsub.f32 0.5, %v135_v31  ;;  %v233_v37 = vmul.f32 %v1739_v47, %v2093_v36  ;;  %v2121_v45 = vmul.f32 0.5, %v1532_v34 }
  0xd1   :  { %1312 = vmatmul.mubr.f32.gmra.mxu0 %v1631_v7  ;;  %v1538_v51 = vpop.eup %1537  ;;  %v132_v23 = vmul.f32 0.05, %v1536_v61  ;;  %v232_v60 = vmul.f32 %v1751_v53, %v2095_v52  ;;  %v2141_v28 = vmul.f32 0.5, %v1536_v61 }
  0xd2   :  { %1314 = vmatprep.mubr.f32.mxu0 %v1622_v6  ;;  %2836 = vst [vmem:[#allocation27_spill] sm:$0xff] %v2106_v27  ;;  %v131_v47 = vmul.f32 0.05, %v1538_v51 }
  0xd3   :  { %2840 = vst [vmem:[#allocation31_spill] sm:$0xff] %v2141_v28 }
  0xd5   :  { %1315 = vmatmul.mubr.f32.gmra.mxu0 %v1617_v5 }
  0xd6   :  { %1317 = vmatprep.mubr.f32.mxu0 %v1605_v3 }
  0xd9   :  { %1318 = vmatmul.mubr.f32.gmra.mxu0 %v1593_v1 }
  0xda   :  { %1320 = vmatprep.mubr.f32.mxu0 %v1600_v2 }
  0xdd   :  { %1321 = vmatmul.mubr.f32.gmra.mxu0 %v1588_v0 }
  0xde   :  { %1411 = vmatprep.mubr.f32.mxu0 %v1612_v4 }
 0x181   :  { %v2057_v42 = vpop.f32.mrf.mxu0 }
 0x183   :  { %v2059_v17 = vpop.f32.mrf.mxu0 }
 0x185   :  { %v2061_v19 = vpop.f32.mrf.mxu0 }
 0x187   :  { %v2064_v39 = vpop.f32.mrf.mxu0 }
 0x189   :  { %v2068_v16 = vpop.f32.mrf.mxu0 }
 0x18b   :  { %v2071_v29 = vpop.f32.mrf.mxu0 }
 0x18d   :  { %v2074_v59 = vpop.f32.mrf.mxu0 }
 0x18f   :  { %v2077_v35 = vpop.f32.mrf.mxu0 }
 0x191   :  { %v2080_v18 = vpop.f32.mrf.mxu0 }
 0x193   :  { %v2083_v21 = vpop.f32.mrf.mxu0 }
 0x195   :  { %v1316_v40 = vpop.f32.mrf.mxu0 }
 0x196   :  { %v391_v53 = vmul.f32 %v1316_v40, %v2121_v45 }
 0x197   :  { %v351_v48 = vpop.f32.mrf.mxu0 }
 0x199   :  { %v1319_v50 = vpop.f32.mrf.mxu0 }
 0x19a   :  { %v393_v24 = vmul.f32 %v1319_v50, %v2097_v38 }
 0x19b   :  { %v361_v33 = vpop.f32.mrf.mxu0 }
 0x19c   :  { %v392_v31 = vmul.f32 %v361_v33, %v2108_v30  ;;  %v2134_v20 = vadd.f32 %v393_v24, %v232_v60  ;;  %v231_v33 = vmul.f32 %v1754_v54, %v2106_v27  ;;  %v2150_v54 = vsub.f32 0.5, %v131_v47  ;;  %v2846_v47 = vld [vmem:[#allocation4_spill] sm:$0xff] }
 0x19d   :  { %v1322_v46 = vpop.f32.mrf.mxu0  ;;  %v389_v60 = vmul.f32 %v2080_v18, %v2141_v28 }
 0x19e   :  { %v395_v49 = vmul.f32 %v1322_v46, %v2091_v32  ;;  %v2116_v46 = vsub.f32 0.5, %v134_v63  ;;  %v2132_v63 = vsub.f32 0.5, %v133_v22  ;;  %v2147_v22 = vadd.f32 %v392_v31, %v231_v33  ;;  %2841 = vst [vmem:[#allocation32_spill] sm:$0xff] %v2150_v54 }
 0x19f   :  { %v371_v25 = vpop.f32.mrf.mxu0 }
 0x1a0   :  { %v2111_v4 = vadd.f32 %v395_v49, %v234_v26  ;;  %v394_v57 = vmul.f32 %v371_v25, %v2103_v62  ;;  %v1540_v26 = vpop.eup %1539  ;;  %v2128_v49 = vmul.f32 0.5, %v1534_v55  ;;  %2838 = vst [vmem:[#allocation29_spill] sm:$0xff] %v2132_v63  ;;  %v2139_v25 = vsub.f32 0.5, %v132_v23 }
 0x1a1   :  { %v1542_v34 = vpop.eup %1541  ;;  %v230_v40 = vmul.f32 %v1767_v58, %v2116_v46  ;;  %v2844_v58 = vld [vmem:[#allocation3_spill] sm:$0xff]  ;;  %v2162_v33 = vmul.f32 0.5, %v1540_v26 }
 0x1a2   :  { %v2124_v50 = vadd.f32 %v394_v57, %v233_v37  ;;  %1323 = vmatprep.subr.mxu1 %v2111_v4  ;;  %2837 = vst [vmem:[#allocation28_spill] sm:$0xff] %v2128_v49  ;;  %2839 = vst [vmem:[#allocation30_spill] sm:$0xff] %v2139_v25  ;;  %v1544_v55 = vpop.eup %1543  ;;  %v130_v37 = vmul.f32 0.05, %v1540_v26  ;;  %v390_v24 = vmul.f32 %v351_v48, %v2128_v49  ;;  %v2152_v57 = vmul.f32 0.5, %v1538_v51 }
 0x1a3   :  { %1324 = vmatpush3.msra.mxu1 %v2111_v4  ;;  %v1546_v61 = vpop.eup %1545  ;;  %v129_v23 = vmul.f32 0.05, %v1542_v34  ;;  %v2157_v27 = vadd.f32 %v391_v53, %v230_v40  ;;  %v229_v48 = vmul.f32 %v2844_v58, %v2132_v63  ;;  %v128_v31 = vmul.f32 0.05, %v1544_v55 }
 0x1a4   :  { %1325 = vmatprep.subr.mxu1 %v2124_v50  ;;  %2842 = vst [vmem:[#allocation33_spill] sm:$0xff] %v2152_v57  ;;  %v2165_v51 = vsub.f32 0.5, %v130_v37  ;;  %v228_v49 = vmul.f32 %v2846_v47, %v2139_v25  ;;  %v388_v18 = vmul.f32 %v2083_v21, %v2152_v57  ;;  %v1548_v40 = vpop.eup %1547  ;;  %v127_v58 = vmul.f32 0.05, %v1546_v61  ;;  %v2849_v21 = vld [vmem:[#allocation5_spill] sm:$0xff]  ;;  %v2851_v25 = vld [vmem:[#allocation6_spill] sm:$0xff] }
 0x1a5   :  { %1326 = vmatpush3.msra.mxu1 %v2124_v50  ;;  %2843 = vst [vmem:[#allocation34_spill] sm:$0xff] %v2157_v27  ;;  %v2171_v53 = vadd.f32 %v390_v24, %v229_v48  ;;  %v2174_v63 = vmul.f32 0.5, %v1542_v34  ;;  %v1550_v26 = vpop.eup %1549  ;;  %v387_v37 = vmul.f32 %v2074_v59, %v2162_v33  ;;  %v2179_v28 = vsub.f32 0.5, %v129_v23 }
 0x1a6   :  { %1327 = vmatprep.subr.mxu1 %v2134_v20  ;;  %2845 = vst [vmem:[#allocation3_spill] sm:$0xff] %v2165_v51  ;;  %v2181_v47 = vadd.f32 %v389_v60, %v228_v49  ;;  %v227_v24 = vmul.f32 %v2849_v21, %v2150_v54  ;;  %v2186_v48 = vsub.f32 0.5, %v128_v31  ;;  %v2188_v57 = vmul.f32 0.5, %v1544_v55  ;;  %v1552_v23 = vpop.eup %1551 }
 0x1a7   :  { %1328 = vmatpush3.msra.mxu1 %v2134_v20  ;;  %2847 = vst [vmem:[#allocation4_spill] sm:$0xff] %v2174_v63  ;;  %2848 = vst [vmem:[#allocation35_spill] sm:$0xff] %v2179_v28  ;;  %v126_v34 = vmul.f32 0.05, %v1548_v40  ;;  %v386_v59 = vmul.f32 %v2077_v35, %v2174_v63  ;;  %v2198_v60 = vsub.f32 0.5, %v127_v58  ;;  %v2200_v31 = vmul.f32 0.5, %v1546_v61  ;;  %v1554_v55 = vpop.eup %1553 }
 0x1a8   :  { %1329 = vmatprep.subr.mxu1 %v2147_v22  ;;  %2850 = vst [vmem:[#allocation5_spill] sm:$0xff] %v2186_v48  ;;  %v2195_v49 = vadd.f32 %v388_v18, %v227_v24  ;;  %v125_v21 = vmul.f32 0.05, %v1550_v26  ;;  %v385_v54 = vmul.f32 %v2068_v16, %v2188_v57  ;;  %v2853_v35 = vld [vmem:[#allocation7_spill] sm:$0xff]  ;;  %v2210_v24 = vmul.f32 0.5, %v1548_v40  ;;  %v2854_v58 = vld [vmem:[#allocation8_spill] sm:$0xff] }
 0x1a9   :  { %1330 = vmatpush3.msra.mxu1 %v2147_v22  ;;  %2852 = vst [vmem:[#allocation6_spill] sm:$0xff] %v2198_v60  ;;  %v225_v18 = vmul.f32 %v2853_v35, %v2179_v28  ;;  %v224_v61 = vmul.f32 %v2854_v58, %v2186_v48  ;;  %v124_v63 = vmul.f32 0.05, %v1552_v23  ;;  %v384_v16 = vmul.f32 %v2071_v29, %v2200_v31  ;;  %v2855_v40 = vld [vmem:[#allocation9_spill] sm:$0xff] }
 0x1aa   :  { %1331 = vmatprep.subr.mxu1 %v2157_v27  ;;  %v223_v35 = vmul.f32 %v2855_v40, %v2198_v60  ;;  %v123_v58 = vmul.f32 0.05, %v1554_v55  ;;  %v383_v48 = vmul.f32 %v2061_v19, %v2210_v24  ;;  %v2234_v29 = vmul.f32 0.5, %v1552_v23 }
 0x1ab   :  { %1332 = vmatpush3.msra.mxu1 %v2157_v27  ;;  %v226_v27 = vmul.f32 %v2851_v25, %v2165_v51  ;;  %v2215_v51 = vsub.f32 0.5, %v126_v34  ;;  %v2229_v34 = vsub.f32 0.5, %v125_v21  ;;  %v2231_v28 = vadd.f32 %v385_v54, %v224_v61 }
 0x1ac   :  { %1333 = vmatprep.subr.mxu1 %v2171_v53  ;;  %v2243_v60 = vadd.f32 %v384_v16, %v223_v35  ;;  %v2246_v19 = vmul.f32 0.5, %v1554_v55  ;;  %v381_v54 = vmul.f32 %v2057_v42, %v2234_v29  ;;  %v2251_v23 = vsub.f32 0.5, %v123_v58 }
 0x1ad   :  { %1334 = vmatpush3.msra.mxu1 %v2171_v53  ;;  %v2205_v25 = vadd.f32 %v387_v37, %v226_v27  ;;  %v2219_v27 = vadd.f32 %v386_v59, %v225_v18  ;;  %v2222_v37 = vmul.f32 0.5, %v1550_v26  ;;  %2856 = vst [vmem:[#allocation7_spill] sm:$0xff] %v2229_v34  ;;  %v2237_v26 = vsub.f32 0.5, %v124_v63  ;;  %v2858_v59 = vld [vmem:[#allocation10_spill] sm:$0xff] }
 0x1ae   :  { %1335 = vmatprep.subr.mxu1 %v2181_v47  ;;  %v222_v18 = vmul.f32 %v2858_v59, %v2215_v51  ;;  %2859 = vst [vmem:[#allocation9_spill] sm:$0xff] %v2246_v19  ;;  %2860 = vst [vmem:[#allocation10_spill] sm:$0xff] %v2251_v23  ;;  %v221_v21 = vmul.f32 %v1863_v43, %v2229_v34  ;;  %v380_v55 = vmul.f32 %v2059_v17, %v2246_v19 }
 0x1af   :  { %1336 = vmatpush3.msra.mxu1 %v2181_v47  ;;  %2857 = vst [vmem:[#allocation8_spill] sm:$0xff] %v2237_v26  ;;  %v382_v40 = vmul.f32 %v2064_v39, %v2222_v37  ;;  %v220_v39 = vmul.f32 %v1877_v56, %v2237_v26  ;;  %v219_v43 = vmul.f32 %v1889_v41, %v2251_v23 }
 0x1b0   :  { %1337 = vmatprep.subr.mxu1 %v2195_v49  ;;  %v2253_v63 = vadd.f32 %v383_v48, %v222_v18  ;;  %v427_v41 = vmul.f32 %v2111_v4, %v2088_v44  ;;  %v426_v59 = vmul.f32 %v2124_v50, %v2093_v36 }
 0x1b1   :  { %1338 = vmatpush3.msra.mxu1 %v2195_v49  ;;  %v2263_v61 = vadd.f32 %v382_v40, %v221_v21  ;;  %v2267_v42 = vadd.f32 %v381_v54, %v220_v39  ;;  %v2273_v48 = vadd.f32 %v380_v55, %v219_v43  ;;  %v425_v40 = vmul.f32 %v2134_v20, %v2095_v52  ;;  %v2862_v55 = vld [vmem:[#allocation27_spill] sm:$0xff]  ;;  %v2863_v20 = vld [vmem:[#allocation34_spill] sm:$0xff] }
 0x1b2   :  { %1339 = vmatprep.subr.mxu1 %v2205_v25  ;;  %v424_v50 = vmul.f32 %v2147_v22, %v2862_v55  ;;  %v423_v43 = vmul.f32 %v2863_v20, %v2116_v46  ;;  %v2866_v22 = vld [vmem:[#allocation29_spill] sm:$0xff] }
 0x1b3   :  { %1340 = vmatpush3.msra.mxu1 %v2205_v25 }
 0x1b4   :  { %1341 = vmatprep.subr.mxu1 %v2219_v27 }
 0x1b5   :  { %1342 = vmatpush3.msra.mxu1 %v2219_v27 }
 0x1b6   :  { %1343 = vmatprep.subr.mxu1 %v2231_v28 }
 0x1b7   :  { %1344 = vmatpush3.msra.mxu1 %v2231_v28 }
 0x1b8   :  { %1345 = vmatprep.subr.mxu1 %v2243_v60 }
 0x1b9   :  { %1346 = vmatpush3.msra.mxu1 %v2243_v60 }
 0x1ba   :  { %1347 = vmatprep.subr.mxu1 %v2253_v63 }
 0x1bb   :  { %1348 = vmatpush3.msra.mxu1 %v2253_v63 }
 0x1bc   :  { %1349 = vmatprep.subr.mxu1 %v2263_v61 }
 0x1bd   :  { %1350 = vmatpush3.msra.mxu1 %v2263_v61 }
 0x1be   :  { %1351 = vmatprep.subr.mxu1 %v2267_v42 }
 0x1bf   :  { %1352 = vmatpush3.msra.mxu1 %v2267_v42 }
 0x1c0   :  { %1353 = vmatprep.subr.mxu1 %v2273_v48 }
 0x1c1   :  { %1354 = vmatpush3.msra.mxu1 %v2273_v48 }
 0x1c2   :  { %1356 = vmatmul.mubr.f32.vlgmr.msra.gmra.mxu1 %v1679_v15 }
 0x1c3   :  { %1358 = vmatprep.mubr.f32.mxu1 %v1672_v14 }
 0x1c6   :  { %1359 = vmatmul.mubr.f32.gmra.mxu1 %v1667_v13 }
 0x1c7   :  { %1361 = vmatprep.mubr.f32.mxu1 %v1660_v12 }
 0x1ca   :  { %1362 = vmatmul.mubr.f32.gmra.mxu1 %v1655_v11  ;;  %v2861_v11 = vld [vmem:[#allocation2_spill] sm:$0xff] }
 0x1cb   :  { %1364 = vmatprep.mubr.f32.mxu1 %v1648_v10 }
 0x1ce   :  { %1365 = vmatmul.mubr.f32.gmra.mxu1 %v1643_v9 }
 0x1cf   :  { %1367 = vmatprep.mubr.f32.mxu1 %v1636_v8 }
 0x1d2   :  { %1368 = vmatmul.mubr.f32.gmra.mxu1 %v1631_v7 }
 0x1d3   :  { %1370 = vmatprep.mubr.f32.mxu1 %v1622_v6 }
 0x1d6   :  { %1371 = vmatmul.mubr.f32.gmra.mxu1 %v1617_v5 }
 0x1d7   :  { %1373 = vmatprep.mubr.f32.mxu1 %v1605_v3 }
 0x1da   :  { %1374 = vmatmul.mubr.f32.gmra.mxu1 %v1593_v1 }
 0x1db   :  { %1376 = vmatprep.mubr.f32.mxu1 %v1600_v2 }
 0x1de   :  { %1377 = vmatmul.mubr.f32.gmra.mxu1 %v1588_v0 }
 0x1df   :  { %1467 = vmatprep.mubr.f32.mxu1 %v2861_v11  ;;  %v2864_v11 = vld [vmem:[#allocation28_spill] sm:$0xff] }
 0x282   :  { %v2295_v10 = vpop.f32.mrf.mxu1 }
 0x284   :  { %v2297_v9 = vpop.f32.mrf.mxu1 }
 0x286   :  { %v2299_v8 = vpop.f32.mrf.mxu1 }
 0x288   :  { %v2301_v7 = vpop.f32.mrf.mxu1 }
 0x28a   :  { %v1363_v6 = vpop.f32.mrf.mxu1 }
 0x28c   :  { %v514_v5 = vpop.f32.mrf.mxu1 }
 0x28e   :  { %v1366_v12 = vpop.f32.mrf.mxu1 }
 0x290   :  { %v524_v3 = vpop.f32.mrf.mxu1 }
 0x292   :  { %v1369_v13 = vpop.f32.mrf.mxu1 }
 0x294   :  { %v534_v1 = vpop.f32.mrf.mxu1 }
 0x296   :  { %v1372_v14 = vpop.f32.mrf.mxu1 }
 0x297   :  { %v584_v4 = vmul.f32 %v1372_v14, %v2121_v45  ;;  %v2865_v14 = vld [vmem:[#allocation31_spill] sm:$0xff] }
 0x298   :  { %v544_v2 = vpop.f32.mrf.mxu1 }
 0x29a   :  { %v1375_v15 = vpop.f32.mrf.mxu1 }
 0x29b   :  { %v586_v35 = vmul.f32 %v1375_v15, %v2097_v38  ;;  %v583_v15 = vmul.f32 %v544_v2, %v2864_v11 }
 0x29c   :  { %v554_v0 = vpop.f32.mrf.mxu1 }
 0x29d   :  { %v585_v54 = vmul.f32 %v554_v0, %v2108_v30  ;;  %v2320_v39 = vadd.f32 %v586_v35, %v425_v40  ;;  %v2868_v35 = vld [vmem:[#allocation33_spill] sm:$0xff] }
 0x29e   :  { %v1378_v56 = vpop.f32.mrf.mxu1 }
 0x29f   :  { %v588_v17 = vmul.f32 %v1378_v56, %v2091_v32  ;;  %v2329_v0 = vadd.f32 %v585_v54, %v424_v50  ;;  %v582_v56 = vmul.f32 %v1369_v13, %v2865_v14  ;;  %v580_v13 = vmul.f32 %v1366_v12, %v2162_v33 }
 0x2a0   :  { %v564_v16 = vpop.f32.mrf.mxu1  ;;  %v578_v12 = vmul.f32 %v1363_v6, %v2188_v57  ;;  %v576_v6 = vmul.f32 %v2299_v8, %v2210_v24  ;;  %v574_v8 = vmul.f32 %v2295_v10, %v2234_v29 }
 0x2a1   :  { %v2307_v58 = vadd.f32 %v588_v17, %v427_v41  ;;  %v587_v18 = vmul.f32 %v564_v16, %v2103_v62  ;;  %v2334_v41 = vadd.f32 %v584_v4, %v423_v43  ;;  %v422_v17 = vmul.f32 %v2171_v53, %v2866_v22  ;;  %v2867_v16 = vld [vmem:[#allocation30_spill] sm:$0xff]  ;;  %v2869_v53 = vld [vmem:[#allocation32_spill] sm:$0xff] }
 0x2a2   :  { %v421_v2 = vmul.f32 %v2181_v47, %v2867_v16  ;;  %v420_v54 = vmul.f32 %v2195_v49, %v2869_v53  ;;  %v2870_v47 = vld [vmem:[#allocation3_spill] sm:$0xff]  ;;  %v2871_v4 = vld [vmem:[#allocation4_spill] sm:$0xff] }
 0x2a3   :  { %v2315_v21 = vadd.f32 %v587_v18, %v426_v59  ;;  %1379 = vmatprep.subr.mxu0 %v2307_v58  ;;  %v581_v59 = vmul.f32 %v534_v1, %v2868_v35  ;;  %v2343_v18 = vadd.f32 %v583_v15, %v422_v17  ;;  %v419_v1 = vmul.f32 %v2205_v25, %v2870_v47  ;;  %v2872_v49 = vld [vmem:[#allocation35_spill] sm:$0xff]  ;;  %v2873_v25 = vld [vmem:[#allocation5_spill] sm:$0xff] }
 0x2a4   :  { %1380 = vmatpush3.msra.mxu0 %v2307_v58  ;;  %v2348_v40 = vadd.f32 %v582_v56, %v421_v2  ;;  %v579_v50 = vmul.f32 %v524_v3, %v2871_v4  ;;  %v418_v15 = vmul.f32 %v2219_v27, %v2872_v49  ;;  %v417_v3 = vmul.f32 %v2231_v28, %v2873_v25  ;;  %v2874_v27 = vld [vmem:[#allocation6_spill] sm:$0xff] }
 0x2a5   :  { %1381 = vmatprep.subr.mxu0 %v2315_v21  ;;  %v2357_v20 = vadd.f32 %v581_v59, %v420_v54  ;;  %v2362_v43 = vadd.f32 %v580_v13, %v419_v1  ;;  %v577_v56 = vmul.f32 %v514_v5, %v2200_v31  ;;  %v416_v59 = vmul.f32 %v2243_v60, %v2874_v27 }
 0x2a6   :  { %1382 = vmatpush3.msra.mxu0 %v2315_v21  ;;  %v2371_v17 = vadd.f32 %v579_v50, %v418_v15  ;;  %v2377_v2 = vadd.f32 %v578_v12, %v417_v3  ;;  %v415_v28 = vmul.f32 %v2253_v63, %v2215_v51  ;;  %v575_v5 = vmul.f32 %v2301_v7, %v2222_v37  ;;  %v2440_v12 = vld [vmem:[%s2740_s0 + $0x20] sm:$0xff]  ;;  %v2446_v15 = vld [vmem:[%s2740_s0 + $0x28] sm:$0xff]  ;;  %v2452_v3 = vld [vmem:[%s2740_s0 + $0x30] sm:$0xff] }
 0x2a7   :  { %1383 = vmatprep.subr.mxu0 %v2320_v39  ;;  %v2387_v13 = vadd.f32 %v577_v56, %v416_v59  ;;  %v414_v54 = vmul.f32 %v2263_v61, %v2229_v34  ;;  %v413_v63 = vmul.f32 %v2267_v42, %v2237_v26  ;;  %v573_v7 = vmul.f32 %v2297_v9, %v2246_v19  ;;  %v2422_v42 = vld [vmem:[%s2740_s0 + $0x8] sm:$0xff]  ;;  %v2434_v9 = vld [vmem:[%s2740_s0 + $0x18] sm:$0xff] }
 0x2a8   :  { %1384 = vmatpush3.msra.mxu0 %v2320_v39  ;;  %v2393_v60 = vadd.f32 %v576_v6, %v415_v28  ;;  %v412_v61 = vmul.f32 %v2273_v48, %v2251_v23  ;;  %2878 = vst [vmem:[#allocation28_spill] sm:$0xff] %v2422_v42  ;;  %v2428_v48 = vld [vmem:[%s2740_s0 + $0x10] sm:$0xff]  ;;  %2880 = vst [vmem:[#allocation29_spill] sm:$0xff] %v2434_v9  ;;  %v2458_v56 = vld [vmem:[%s2740_s0 + $0x38] sm:$0xff] }
 0x2a9   :  { %1385 = vmatprep.subr.mxu0 %v2329_v0  ;;  %v2403_v1 = vadd.f32 %v575_v5, %v414_v54  ;;  %v2407_v10 = vadd.f32 %v574_v8, %v413_v63  ;;  %2879 = vst [vmem:[#allocation31_spill] sm:$0xff] %v2428_v48  ;;  %2881 = vst [vmem:[#allocation30_spill] sm:$0xff] %v2440_v12  ;;  %v2464_v6 = vld [vmem:[%s2740_s0 + $0x40] sm:$0xff]  ;;  %v2470_v59 = vld [vmem:[%s2740_s0 + $0x48] sm:$0xff] }
 0x2aa   :  { %1386 = vmatpush3.msra.mxu0 %v2329_v0  ;;  %v2413_v50 = vadd.f32 %v573_v7, %v412_v61  ;;  %2882 = vst [vmem:[#allocation33_spill] sm:$0xff] %v2446_v15  ;;  %2883 = vst [vmem:[#allocation32_spill] sm:$0xff] %v2452_v3  ;;  %v2476_v28 = vld [vmem:[%s2740_s0 + $0x50] sm:$0xff]  ;;  %v2482_v5 = vld [vmem:[%s2740_s0 + $0x58] sm:$0xff] }
 0x2ab   :  { %1387 = vmatprep.subr.mxu0 %v2334_v41  ;;  %2875 = vst [vmem:[#allocation2_spill] sm:$0xff] %v2403_v1  ;;  %2876 = vst [vmem:[#allocation27_spill] sm:$0xff] %v2407_v10  ;;  %v2488_v8 = vld [vmem:[%s2740_s0 + $0x60] sm:$0xff]  ;;  %v2494_v54 = vld [vmem:[%s2740_s0 + $0x68] sm:$0xff] }
 0x2ac   :  { %1388 = vmatpush3.msra.mxu0 %v2334_v41  ;;  %2877 = vst [vmem:[#allocation34_spill] sm:$0xff] %v2413_v50  ;;  %2884 = vst [vmem:[#allocation3_spill] sm:$0xff] %v2458_v56  ;;  %v2500_v63 = vld [vmem:[%s2740_s0 + $0x70] sm:$0xff]  ;;  %v2506_v7 = vld [vmem:[%s2740_s0 + $0x78] sm:$0xff] }
 0x2ad   :  { %1389 = vmatprep.subr.mxu0 %v2343_v18  ;;  %2885 = vst [vmem:[#allocation4_spill] sm:$0xff] %v2464_v6  ;;  %2886 = vst [vmem:[#allocation35_spill] sm:$0xff] %v2470_v59 }
 0x2ae   :  { %1390 = vmatpush3.msra.mxu0 %v2343_v18  ;;  %2887 = vst [vmem:[#allocation5_spill] sm:$0xff] %v2476_v28  ;;  %2888 = vst [vmem:[#allocation6_spill] sm:$0xff] %v2482_v5 }
 0x2af   :  { %1391 = vmatprep.subr.mxu0 %v2348_v40  ;;  %2889 = vst [vmem:[#allocation36_spill] sm:$0xff] %v2488_v8  ;;  %2890 = vst [vmem:[#allocation37_spill] sm:$0xff] %v2494_v54 }
 0x2b0   :  { %1392 = vmatpush3.msra.mxu0 %v2348_v40  ;;  %2891 = vst [vmem:[#allocation38_spill] sm:$0xff] %v2500_v63  ;;  %2892 = vst [vmem:[#allocation39_spill] sm:$0xff] %v2506_v7 }
 0x2b1   :  { %1393 = vmatprep.subr.mxu0 %v2357_v20 }
 0x2b2   :  { %1394 = vmatpush3.msra.mxu0 %v2357_v20 }
 0x2b3   :  { %1395 = vmatprep.subr.mxu0 %v2362_v43 }
 0x2b4   :  { %1396 = vmatpush3.msra.mxu0 %v2362_v43 }
 0x2b5   :  { %1397 = vmatprep.subr.mxu0 %v2371_v17 }
 0x2b6   :  { %1398 = vmatpush3.msra.mxu0 %v2371_v17 }
 0x2b7   :  { %1399 = vmatprep.subr.mxu0 %v2377_v2 }
 0x2b8   :  { %1400 = vmatpush3.msra.mxu0 %v2377_v2 }
 0x2b9   :  { %1401 = vmatprep.subr.mxu0 %v2387_v13 }
 0x2ba   :  { %1402 = vmatpush3.msra.mxu0 %v2387_v13 }
 0x2bb   :  { %1403 = vmatprep.subr.mxu0 %v2393_v60 }
 0x2bc   :  { %1404 = vmatpush3.msra.mxu0 %v2393_v60 }
 0x2bd   :  { %1405 = vmatprep.subr.mxu0 %v2403_v1 }
 0x2be   :  { %1406 = vmatpush3.msra.mxu0 %v2403_v1  ;;  %v618_v1 = vmul.f32 %v2320_v39, %v2095_v52 }
 0x2bf   :  { %1407 = vmatprep.subr.mxu0 %v2407_v10 }
 0x2c0   :  { %1408 = vmatpush3.msra.mxu0 %v2407_v10  ;;  %v619_v10 = vmul.f32 %v2315_v21, %v2093_v36  ;;  %v617_v21 = vmul.f32 %v2329_v0, %v2862_v55  ;;  %v615_v0 = vmul.f32 %v2343_v18, %v2866_v22  ;;  %v613_v18 = vmul.f32 %v2357_v20, %v2869_v53 }
 0x2c1   :  { %1409 = vmatprep.subr.mxu0 %v2413_v50  ;;  %v611_v20 = vmul.f32 %v2371_v17, %v2872_v49  ;;  %v609_v17 = vmul.f32 %v2387_v13, %v2874_v27 }
 0x2c2   :  { %1410 = vmatpush3.msra.mxu0 %v2413_v50 }
 0x2c3   :  { %1412 = vmatmul.mubr.f32.vlgmr.msra.gmra.mxu0 %v2422_v42 }
 0x2c4   :  { %1414 = vmatprep.mubr.f32.mxu0 %v2428_v48 }
 0x2c7   :  { %1415 = vmatmul.mubr.f32.gmra.mxu0 %v2434_v9 }
 0x2c8   :  { %1417 = vmatprep.mubr.f32.mxu0 %v2440_v12 }
 0x2cb   :  { %1418 = vmatmul.mubr.f32.gmra.mxu0 %v2446_v15 }
 0x2cc   :  { %1420 = vmatprep.mubr.f32.mxu0 %v2452_v3 }
 0x2cf   :  { %1421 = vmatmul.mubr.f32.gmra.mxu0 %v2458_v56 }
 0x2d0   :  { %1423 = vmatprep.mubr.f32.mxu0 %v2464_v6 }
 0x2d3   :  { %1424 = vmatmul.mubr.f32.gmra.mxu0 %v2470_v59 }
 0x2d4   :  { %1426 = vmatprep.mubr.f32.mxu0 %v2476_v28 }
 0x2d7   :  { %1427 = vmatmul.mubr.f32.gmra.mxu0 %v2482_v5 }
 0x2d8   :  { %1429 = vmatprep.mubr.f32.mxu0 %v2488_v8 }
 0x2db   :  { %1430 = vmatmul.mubr.f32.gmra.mxu0 %v2494_v54 }
 0x2dc   :  { %1432 = vmatprep.mubr.f32.mxu0 %v2500_v63 }
 0x2df   :  { %1433 = vmatmul.mubr.f32.gmra.mxu0 %v2506_v7  ;;  %v620_v7 = vmul.f32 %v2307_v58, %v2088_v44 }
 0x383   :  { %v2509_v61 = vpop.f32.mrf.mxu0 }
 0x384   :  { %2893 = vst [vmem:[#allocation40_spill] sm:$0xff] %v2509_v61 }
 0x385   :  { %v2511_v8 = vpop.f32.mrf.mxu0 }
 0x386   :  { %2894 = vst [vmem:[#allocation41_spill] sm:$0xff] %v2511_v8 }
 0x387   :  { %v2513_v5 = vpop.f32.mrf.mxu0 }
 0x389   :  { %v2515_v54 = vpop.f32.mrf.mxu0 }
 0x38b   :  { %v1419_v28 = vpop.f32.mrf.mxu0 }
 0x38d   :  { %v707_v59 = vpop.f32.mrf.mxu0 }
 0x38f   :  { %v1422_v6 = vpop.f32.mrf.mxu0 }
 0x391   :  { %v717_v56 = vpop.f32.mrf.mxu0 }
 0x393   :  { %v1425_v63 = vpop.f32.mrf.mxu0 }
 0x395   :  { %v727_v3 = vpop.f32.mrf.mxu0 }
 0x397   :  { %v1428_v15 = vpop.f32.mrf.mxu0 }
 0x398   :  { %v777_v58 = vmul.f32 %v1428_v15, %v2121_v45 }
 0x399   :  { %v737_v12 = vpop.f32.mrf.mxu0 }
 0x39b   :  { %v1431_v9 = vpop.f32.mrf.mxu0 }
 0x39c   :  { %v779_v8 = vmul.f32 %v1431_v9, %v2097_v38 }
 0x39d   :  { %v747_v48 = vpop.f32.mrf.mxu0 }
 0x39e   :  { %v778_v34 = vmul.f32 %v747_v48, %v2108_v30  ;;  %v773_v48 = vmul.f32 %v1422_v6, %v2162_v33 }
 0x39f   :  { %v1434_v42 = vpop.f32.mrf.mxu0 }
 0x3a0   :  { %v781_v50 = vmul.f32 %v1434_v42, %v2091_v32  ;;  %v2543_v39 = vadd.f32 %v778_v34, %v617_v21  ;;  %v774_v34 = vmul.f32 %v727_v3, %v2868_v35  ;;  %v771_v3 = vmul.f32 %v1419_v28, %v2188_v57  ;;  %v2896_v21 = vld [vmem:[#allocation7_spill] sm:$0xff] }
 0x3a1   :  { %v757_v23 = vpop.f32.mrf.mxu0  ;;  %v769_v28 = vmul.f32 %v2513_v5, %v2210_v24  ;;  %v2895_v5 = vld [vmem:[#allocation40_spill] sm:$0xff] }
 0x3a2   :  { %v2521_v19 = vadd.f32 %v781_v50, %v620_v7  ;;  %v780_v26 = vmul.f32 %v757_v23, %v2103_v62  ;;  %v2534_v50 = vadd.f32 %v779_v8, %v618_v1  ;;  %v616_v23 = vmul.f32 %v2334_v41, %v2116_v46 }
 0x3a3   :  { %v775_v1 = vmul.f32 %v1425_v63, %v2865_v14  ;;  %v614_v41 = vmul.f32 %v2348_v40, %v2867_v16  ;;  %v612_v40 = vmul.f32 %v2362_v43, %v2870_v47  ;;  %v2571_v15 = vadd.f32 %v774_v34, %v613_v18 }
 0x3a4   :  { %v2529_v61 = vadd.f32 %v780_v26, %v619_v10  ;;  %1435 = vmatprep.subr.mxu1 %v2521_v19  ;;  %v776_v26 = vmul.f32 %v737_v12, %v2864_v11  ;;  %v2548_v10 = vadd.f32 %v777_v58, %v616_v23  ;;  %v772_v12 = vmul.f32 %v717_v56, %v2871_v4  ;;  %v2897_v23 = vld [vmem:[#allocation2_spill] sm:$0xff] }
 0x3a5   :  { %1436 = vmatpush3.msra.mxu1 %v2521_v19  ;;  %v2562_v9 = vadd.f32 %v775_v1, %v614_v41  ;;  %v2576_v6 = vadd.f32 %v773_v48, %v612_v40  ;;  %v610_v43 = vmul.f32 %v2377_v2, %v2873_v25  ;;  %v770_v56 = vmul.f32 %v707_v59, %v2200_v31  ;;  %v2899_v1 = vld [vmem:[#allocation27_spill] sm:$0xff]  ;;  %v2901_v41 = vld [vmem:[#allocation41_spill] sm:$0xff]  ;;  %v2902_v40 = vld [vmem:[#allocation10_spill] sm:$0xff] }
 0x3a6   :  { %1437 = vmatprep.subr.mxu1 %v2529_v61  ;;  %v2557_v42 = vadd.f32 %v776_v26, %v615_v0  ;;  %v2585_v8 = vadd.f32 %v772_v12, %v611_v20  ;;  %v608_v2 = vmul.f32 %v2393_v60, %v2215_v51  ;;  %v768_v59 = vmul.f32 %v2515_v54, %v2222_v37  ;;  %v2898_v60 = vld [vmem:[#allocation8_spill] sm:$0xff]  ;;  %v2900_v0 = vld [vmem:[#allocation9_spill] sm:$0xff]  ;;  %v2903_v12 = vld [vmem:[#allocation34_spill] sm:$0xff] }
 0x3a7   :  { %1438 = vmatpush3.msra.mxu1 %v2529_v61  ;;  %v2591_v63 = vadd.f32 %v771_v3, %v610_v43  ;;  %v2601_v7 = vadd.f32 %v770_v56, %v609_v17  ;;  %v767_v58 = vmul.f32 %v2895_v5, %v2234_v29  ;;  %v607_v26 = vmul.f32 %v2897_v23, %v2896_v21  ;;  %v2904_v43 = vld [vmem:[#allocation28_spill] sm:$0xff]  ;;  %v2905_v56 = vld [vmem:[#allocation31_spill] sm:$0xff]  ;;  %v2907_v17 = vld [vmem:[#allocation30_spill] sm:$0xff] }
 0x3a8   :  { %1439 = vmatprep.subr.mxu1 %v2534_v50  ;;  %v785_v13 = vadd.f32 %v769_v28, %v608_v2  ;;  %v606_v54 = vmul.f32 %v2899_v1, %v2898_v60  ;;  %v766_v34 = vmul.f32 %v2901_v41, %v2900_v0  ;;  %v605_v3 = vmul.f32 %v2903_v12, %v2902_v40  ;;  %v2906_v28 = vld [vmem:[#allocation29_spill] sm:$0xff]  ;;  %v2910_v5 = vld [vmem:[#allocation3_spill] sm:$0xff]  ;;  %v2914_v1 = vld [vmem:[#allocation6_spill] sm:$0xff] }
 0x3a9   :  { %1440 = vmatpush3.msra.mxu1 %v2534_v50  ;;  %v784_v48 = vadd.f32 %v768_v59, %v607_v26  ;;  %v2908_v2 = vld [vmem:[#allocation33_spill] sm:$0xff]  ;;  %v2909_v59 = vld [vmem:[#allocation32_spill] sm:$0xff]  ;;  %v2912_v23 = vld [vmem:[#allocation35_spill] sm:$0xff] }
 0x3aa   :  { %1441 = vmatprep.subr.mxu1 %v2543_v39  ;;  %v783_v18 = vadd.f32 %v767_v58, %v606_v54  ;;  %v782_v20 = vadd.f32 %v766_v34, %v605_v3  ;;  %v2911_v58 = vld [vmem:[#allocation4_spill] sm:$0xff]  ;;  %v2913_v26 = vld [vmem:[#allocation5_spill] sm:$0xff]  ;;  %v2917_v34 = vld [vmem:[#allocation38_spill] sm:$0xff] }
 0x3ab   :  { %1442 = vmatpush3.msra.mxu1 %v2543_v39  ;;  %v2915_v54 = vld [vmem:[#allocation36_spill] sm:$0xff]  ;;  %v2916_v41 = vld [vmem:[#allocation37_spill] sm:$0xff]  ;;  %v2918_v12 = vld [vmem:[#allocation39_spill] sm:$0xff] }
 0x3ac   :  { %1443 = vmatprep.subr.mxu1 %v2548_v10 }
 0x3ad   :  { %1444 = vmatpush3.msra.mxu1 %v2548_v10 }
 0x3ae   :  { %1445 = vmatprep.subr.mxu1 %v2557_v42 }
 0x3af   :  { %1446 = vmatpush3.msra.mxu1 %v2557_v42 }
 0x3b0   :  { %1447 = vmatprep.subr.mxu1 %v2562_v9 }
 0x3b1   :  { %1448 = vmatpush3.msra.mxu1 %v2562_v9 }
 0x3b2   :  { %1449 = vmatprep.subr.mxu1 %v2571_v15 }
 0x3b3   :  { %1450 = vmatpush3.msra.mxu1 %v2571_v15 }
 0x3b4   :  { %1451 = vmatprep.subr.mxu1 %v2576_v6 }
 0x3b5   :  { %1452 = vmatpush3.msra.mxu1 %v2576_v6 }
 0x3b6   :  { %1453 = vmatprep.subr.mxu1 %v2585_v8 }
 0x3b7   :  { %1454 = vmatpush3.msra.mxu1 %v2585_v8 }
 0x3b8   :  { %1455 = vmatprep.subr.mxu1 %v2591_v63 }
 0x3b9   :  { %1456 = vmatpush3.msra.mxu1 %v2591_v63 }
 0x3ba   :  { %1457 = vmatprep.subr.mxu1 %v2601_v7 }
 0x3bb   :  { %1458 = vmatpush3.msra.mxu1 %v2601_v7 }
 0x3bc   :  { %1459 = vmatprep.subr.mxu1 %v785_v13 }
 0x3bd   :  { %1460 = vmatpush3.msra.mxu1 %v785_v13 }
 0x3be   :  { %1461 = vmatprep.subr.mxu1 %v784_v48 }
 0x3bf   :  { %1462 = vmatpush3.msra.mxu1 %v784_v48 }
 0x3c0   :  { %1463 = vmatprep.subr.mxu1 %v783_v18 }
 0x3c1   :  { %1464 = vmatpush3.msra.mxu1 %v783_v18 }
 0x3c2   :  { %1465 = vmatprep.subr.mxu1 %v782_v20 }
 0x3c3   :  { %1466 = vmatpush3.msra.mxu1 %v782_v20 }
 0x3c4   :  { %1468 = vmatmul.mubr.f32.vlgmr.msra.gmra.mxu1 %v2904_v43  ;;  %v799_v43 = vmul.f32 %v783_v18, %v2898_v60 }
 0x3c5   :  { %1470 = vmatprep.mubr.f32.mxu1 %v2905_v56 }
 0x3c8   :  { %1471 = vmatmul.mubr.f32.gmra.mxu1 %v2906_v28 }
 0x3c9   :  { %1473 = vmatprep.mubr.f32.mxu1 %v2907_v17 }
 0x3cc   :  { %1474 = vmatmul.mubr.f32.gmra.mxu1 %v2908_v2  ;;  %v798_v2 = vmul.f32 %v782_v20, %v2902_v40  ;;  %v800_v40 = vmul.f32 %v784_v48, %v2896_v21  ;;  %v2922_v21 = vld [vmem:[#allocation14_spill] sm:$0xff] }
 0x3cd   :  { %1476 = vmatprep.mubr.f32.mxu1 %v2909_v59 }
 0x3d0   :  { %1477 = vmatmul.mubr.f32.gmra.mxu1 %v2910_v5 }
 0x3d1   :  { %1479 = vmatprep.mubr.f32.mxu1 %v2911_v58  ;;  %v2919_v58 = vld [vmem:[#allocation12_spill] sm:$0xff] }
 0x3d4   :  { %1480 = vmatmul.mubr.f32.gmra.mxu1 %v2912_v23 }
 0x3d5   :  { %1482 = vmatprep.mubr.f32.mxu1 %v2913_v26 }
 0x3d8   :  { %1483 = vmatmul.mubr.f32.gmra.mxu1 %v2914_v1  ;;  %v801_v1 = vmul.f32 %v785_v13, %v2215_v51  ;;  %v2921_v51 = vld [vmem:[#allocation11_spill] sm:$0xff] }
 0x3d9   :  { %1485 = vmatprep.mubr.f32.mxu1 %v2915_v54 }
 0x3dc   :  { %1486 = vmatmul.mubr.f32.gmra.mxu1 %v2916_v41 }
 0x3dd   :  { %1488 = vmatprep.mubr.f32.mxu1 %v2917_v34  ;;  %v803_v34 = vmul.f32 %v2591_v63, %v2873_v25  ;;  %v2923_v25 = vld [vmem:[#allocation15_spill] sm:$0xff] }
 0x3e0   :  { %1489 = vmatmul.mubr.f32.gmra.mxu1 %v2918_v12 }
 0x484   :  { %v1469_v3 = vpop.f32.mrf.mxu1 }
 0x485   :  { %v960_v56 = vmul.f32 %v1469_v3, %v2234_v29  ;;  %v2920_v29 = vld [vmem:[#allocation13_spill] sm:$0xff] }
 0x486   :  { %v880_v28 = vpop.f32.mrf.mxu1 }
 0x487   :  { %v976_v17 = vadd.f32 %v960_v56, %v799_v43  ;;  %v959_v59 = vmul.f32 %v880_v28, %v2900_v0  ;;  %v802_v43 = vmul.f32 %v2601_v7, %v2874_v27  ;;  %v2924_v27 = vld [vmem:[#allocation16_spill] sm:$0xff] }
 0x488   :  { %v1472_v5 = vpop.f32.mrf.mxu1 }
 0x489   :  { %v1104_v23 = vmul.f32 %v2919_v58, %v976_v17  ;;  %v975_v26 = vadd.f32 %v959_v59, %v798_v2  ;;  %v962_v54 = vmul.f32 %v1472_v5, %v2210_v24  ;;  %v805_v17 = vmul.f32 %v2576_v6, %v2870_v47  ;;  %v2925_v47 = vld [vmem:[#allocation17_spill] sm:$0xff] }
 0x48a   :  { %v890_v41 = vpop.f32.mrf.mxu1  ;;  %v804_v5 = vmul.f32 %v2585_v8, %v2872_v49  ;;  %v2926_v49 = vld [vmem:[#allocation18_spill] sm:$0xff] }
 0x48b   :  { %1120 = vst [vmem:[%s2742_s2 + $0x8] sm:$0xff] %v1104_v23  ;;  %v1103_v60 = vmul.f32 %v2920_v29, %v975_v26  ;;  %v978_v18 = vadd.f32 %v962_v54, %v801_v1  ;;  %v961_v0 = vmul.f32 %v890_v41, %v2222_v37  ;;  %v807_v26 = vmul.f32 %v2562_v9, %v2867_v16  ;;  %v2927_v16 = vld [vmem:[#allocation19_spill] sm:$0xff] }
 0x48c   :  { %v1475_v20 = vpop.f32.mrf.mxu1  ;;  %v806_v41 = vmul.f32 %v2571_v15, %v2869_v53  ;;  %v2928_v53 = vld [vmem:[#allocation20_spill] sm:$0xff] }
 0x48d   :  { %1119 = vst [vmem:[%s2742_s2] sm:$0xff] %v1103_v60  ;;  %v1106_v13 = vmul.f32 %v2921_v51, %v978_v18  ;;  %v977_v24 = vadd.f32 %v961_v0, %v800_v40  ;;  %v964_v12 = vmul.f32 %v1475_v20, %v2188_v57  ;;  %v809_v18 = vmul.f32 %v2548_v10, %v2116_v46  ;;  %v2929_v46 = vld [vmem:[#allocation21_spill] sm:$0xff] }
 0x48e   :  { %v900_v3 = vpop.f32.mrf.mxu1  ;;  %v808_v20 = vmul.f32 %v2557_v42, %v2866_v22  ;;  %v2930_v22 = vld [vmem:[#allocation22_spill] sm:$0xff] }
 0x48f   :  { %1122 = vst [vmem:[%s2742_s2 + $0x18] sm:$0xff] %v1106_v13  ;;  %v1105_v37 = vmul.f32 %v2922_v21, %v977_v24  ;;  %v980_v48 = vadd.f32 %v964_v12, %v803_v34  ;;  %v963_v56 = vmul.f32 %v900_v3, %v2200_v31  ;;  %v811_v24 = vmul.f32 %v2534_v50, %v2095_v52  ;;  %v2931_v52 = vld [vmem:[#allocation23_spill] sm:$0xff] }
 0x490   :  { %v1478_v28 = vpop.f32.mrf.mxu1  ;;  %v810_v3 = vmul.f32 %v2543_v39, %v2862_v55  ;;  %v2932_v55 = vld [vmem:[#allocation24_spill] sm:$0xff] }
 0x491   :  { %1121 = vst [vmem:[%s2742_s2 + $0x10] sm:$0xff] %v1105_v37  ;;  %v1108_v57 = vmul.f32 %v2923_v25, %v980_v48  ;;  %v979_v63 = vadd.f32 %v963_v56, %v802_v43  ;;  %v966_v2 = vmul.f32 %v1478_v28, %v2162_v33  ;;  %v813_v48 = vmul.f32 %v2521_v19, %v2088_v44  ;;  %v2933_v44 = vld [vmem:[#allocation25_spill] sm:$0xff] }
 0x492   :  { %v910_v59 = vpop.f32.mrf.mxu1  ;;  %v812_v28 = vmul.f32 %v2529_v61, %v2093_v36 }
 0x493   :  { %1124 = vst [vmem:[%s2742_s2 + $0x28] sm:$0xff] %v1108_v57  ;;  %v1107_v31 = vmul.f32 %v2924_v27, %v979_v63  ;;  %v982_v7 = vadd.f32 %v966_v2, %v805_v17  ;;  %v965_v58 = vmul.f32 %v910_v59, %v2871_v4  ;;  %v2934_v57 = vld [vmem:[#allocation26_spill] sm:$0xff] }
 0x494   :  { %v1481_v23 = vpop.f32.mrf.mxu1 }
 0x495   :  { %1123 = vst [vmem:[%s2742_s2 + $0x20] sm:$0xff] %v1107_v31  ;;  %v1110_v33 = vmul.f32 %v2925_v47, %v982_v7  ;;  %v981_v6 = vadd.f32 %v965_v58, %v804_v5  ;;  %v968_v1 = vmul.f32 %v1481_v23, %v2865_v14 }
 0x496   :  { %v920_v54 = vpop.f32.mrf.mxu1 }
 0x497   :  { %1126 = vst [vmem:[%s2742_s2 + $0x38] sm:$0xff] %v1110_v33  ;;  %v1109_v4 = vmul.f32 %v2926_v49, %v981_v6  ;;  %v984_v8 = vadd.f32 %v968_v1, %v807_v26  ;;  %v967_v29 = vmul.f32 %v920_v54, %v2868_v35 }
 0x498   :  { %v1484_v60 = vpop.f32.mrf.mxu1 }
 0x499   :  { %1125 = vst [vmem:[%s2742_s2 + $0x30] sm:$0xff] %v1109_v4  ;;  %v1112_v14 = vmul.f32 %v2927_v16, %v984_v8  ;;  %v983_v9 = vadd.f32 %v967_v29, %v806_v41  ;;  %v970_v40 = vmul.f32 %v1484_v60, %v2121_v45 }
 0x49a   :  { %v930_v0 = vpop.f32.mrf.mxu1 }
 0x49b   :  { %1128 = vst [vmem:[%s2742_s2 + $0x48] sm:$0xff] %v1112_v14  ;;  %v1111_v35 = vmul.f32 %v2928_v53, %v983_v9  ;;  %v986_v15 = vadd.f32 %v970_v40, %v809_v18  ;;  %v969_v51 = vmul.f32 %v930_v0, %v2864_v11 }
 0x49c   :  { %v1487_v13 = vpop.f32.mrf.mxu1 }
 0x49d   :  { %1127 = vst [vmem:[%s2742_s2 + $0x40] sm:$0xff] %v1111_v35  ;;  %v1114_v45 = vmul.f32 %v2929_v46, %v986_v15  ;;  %v985_v10 = vadd.f32 %v969_v51, %v808_v20  ;;  %v972_v34 = vmul.f32 %v1487_v13, %v2097_v38 }
 0x49e   :  { %v940_v12 = vpop.f32.mrf.mxu1 }
 0x49f   :  { %1130 = vst [vmem:[%s2742_s2 + $0x58] sm:$0xff] %v1114_v45  ;;  %v1113_v11 = vmul.f32 %v2930_v22, %v985_v10  ;;  %v988_v42 = vadd.f32 %v972_v34, %v811_v24  ;;  %v971_v21 = vmul.f32 %v940_v12, %v2108_v30 }
 0x4a0   :  { %v1490_v37 = vpop.f32.mrf.mxu1 }
 0x4a1   :  { %1129 = vst [vmem:[%s2742_s2 + $0x50] sm:$0xff] %v1113_v11  ;;  %v1116_v38 = vmul.f32 %v2931_v52, %v988_v42  ;;  %v987_v50 = vadd.f32 %v971_v21, %v810_v3  ;;  %v974_v43 = vmul.f32 %v1490_v37, %v2091_v32 }
 0x4a2   :  { %v950_v56 = vpop.f32.mrf.mxu1 }
 0x4a3   :  { %1132 = vst [vmem:[%s2742_s2 + $0x68] sm:$0xff] %v1116_v38  ;;  %v1115_v30 = vmul.f32 %v2932_v55, %v987_v50  ;;  %v990_v39 = vadd.f32 %v974_v43, %v813_v48  ;;  %v973_v25 = vmul.f32 %v950_v56, %v2103_v62 }
 0x4a5   :  { %1131 = vst [vmem:[%s2742_s2 + $0x60] sm:$0xff] %v1115_v30  ;;  %v1118_v19 = vmul.f32 %v2933_v44, %v990_v39  ;;  %v989_v32 = vadd.f32 %v973_v25, %v812_v28 }
 0x4a7   :  { %1134 = vst [vmem:[%s2742_s2 + $0x78] sm:$0xff] %v1118_v19  ;;  %v1117_v63 = vmul.f32 %v2934_v57, %v989_v32 }
 0x4a9   :  { %1133 = vst [vmem:[%s2742_s2 + $0x70] sm:$0xff] %v1117_v63 }

</bundles_post_ra>
